<compile_context>
chip_gen: v7x
topology: tpu7x:2x2x1
jax: 0.10.0
libtpu: 0.0.40
codegen_flags: <defaults>
</compile_context>

<pallas_src>
import functools
import math

import jax
import jax.numpy as jnp
from jax.experimental import pallas as pl
from jax.experimental.pallas import tpu as pltpu

LN_EPS = 1e-5  # torch.nn.LayerNorm default


def _gelu(x):
    # exact (erf-based) GELU, matching torch.nn.GELU() default
    return 0.5 * x * (1.0 + jax.lax.erf(x * (1.0 / math.sqrt(2.0))))


def _dot(a, b):
    # fp32-exact matmul (parity with PyTorch fp32 nn.Linear)
    return jnp.dot(a, b, preferred_element_type=jnp.float32,
                   precision=jax.lax.Precision.HIGHEST)


# ----------------------------- fused Pallas kernel --------------------------

def fused_mlp_skip_kernel(
        x_ref, temb_ref,
        te_w1_ref, te_b1_ref, te_w2_ref, te_b2_ref,
        in_w_ref, in_b_ref, in_cw_ref, in_cb_ref, in_g_ref, in_bt_ref,
        lw_h_ref, lw_x_ref, lb_ref, lcw_ref, lcb_ref, lg_ref, lbt_ref,
        out_wh_ref, out_wx_ref, out_b_ref,
        o_ref, *, num_mid_layers):
    """Entire MLPSkipNet forward for one batch: everything VMEM-resident."""
    x = x_ref[...]  # (B, C), f32

    # ---- time_embed: Linear -> GELU -> Linear ----
    h0 = _dot(temb_ref[...], te_w1_ref[...]) + te_b1_ref[...]
    cond = _dot(_gelu(h0), te_w2_ref[...]) + te_b2_ref[...]
    # GELU(cond) is identical for every MLPLNAct layer -> compute once (hoisted).
    gcond = _gelu(cond)

    def mlpln(y_lin, cw, cb, g, bt):
        # MLPLNAct tail: y = Linear(.) (given); y *= (1 + Linear(GELU(cond)));
        # LayerNorm; GELU; dropout p=0 -> Identity.
        c = _dot(gcond, cw) + cb
        y = y_lin * (1.0 + c)
        mean = jnp.mean(y, axis=-1, keepdims=True)
        var = jnp.mean(jnp.square(y - mean), axis=-1, keepdims=True)
        y = (y - mean) * jax.lax.rsqrt(var + LN_EPS)
        y = y * g + bt
        return _gelu(y)

    # ---- in_layer ----
    h = mlpln(_dot(x, in_w_ref[...]) + in_b_ref[...],
              in_cw_ref[...], in_cb_ref[...], in_g_ref[...], in_bt_ref[...])

    # ---- middle skip layers: cat((h, x)) @ W  ==  h @ W_h + x @ W_x ----
    for l in range(num_mid_layers):  # static unroll (small L)
        y_lin = _dot(h, lw_h_ref[l]) + _dot(x, lw_x_ref[l]) + lb_ref[l]
        h = mlpln(y_lin, lcw_ref[l], lcb_ref[l], lg_ref[l], lbt_ref[l])

    # ---- out_layer (split the same way) ----
    o_ref[...] = (_dot(h, out_wh_ref[...]) + _dot(x, out_wx_ref[...])
                  + out_b_ref[...]).astype(o_ref.dtype)


# ----------------------------- model glue -----------------------------------

def timestep_embedding(t, dim, max_period=10000):
    """Sinusoidal embedding; trivial elementwise math kept in plain JAX (pre-kernel)."""
    half = dim // 2
    freqs = jnp.exp(-math.log(max_period) * jnp.arange(half, dtype=jnp.float32) / half)
    args = t[:, None].astype(jnp.float32) * freqs[None]
    emb = jnp.concatenate([jnp.cos(args), jnp.sin(args)], axis=-1)
    if dim % 2:
        emb = jnp.concatenate([emb, jnp.zeros_like(emb[:, :1])], axis=-1)
    return emb


def mlp_skip_net(params, x, t):
    temb = timestep_embedding(t, params["time_emb_channels"])
    B, C = x.shape
    L = params["lw_h"].shape[0]

    args = (
        x, temb,
        params["te_w1"], params["te_b1"], params["te_w2"], params["te_b2"],
        params["in_w"], params["in_b"], params["in_cw"], params["in_cb"],
        params["in_g"], params["in_bt"],
        params["lw_h"], params["lw_x"], params["lb"],
        params["lcw"], params["lcb"], params["lg"], params["lbt"],
        params["out_wh"], params["out_wx"], params["out_b"],
    )

    vmem = lambda: pl.BlockSpec(memory_space=pltpu.MemorySpace.VMEM)
    return pl.pallas_call(
        functools.partial(fused_mlp_skip_kernel, num_mid_layers=L),
        out_shape=jax.ShapeDtypeStruct((B, C), x.dtype),
        # Single invocation (no grid): every operand lives fully in VMEM, one launch total.
        in_specs=[vmem() for _ in args],
        out_specs=vmem(),
    )(*args)


def mlp_skip_net_reference(params, x, t):
    """Pure-JAX reference (same math as the PyTorch module) for correctness checking."""
    temb = timestep_embedding(t, params["time_emb_channels"])
    h0 = temb @ params["te_w1"] + params["te_b1"]
    cond = _gelu(h0) @ params["te_w2"] + params["te_b2"]
    gcond = _gelu(cond)

    def mlpln(y, cw, cb, g, bt):
        c = gcond @ cw + cb
        y = y * (1.0 + c)
        mean = jnp.mean(y, axis=-1, keepdims=True)
        var = jnp.mean(jnp.square(y - mean), axis=-1, keepdims=True)
        y = (y - mean) * jax.lax.rsqrt(var + LN_EPS)
        return _gelu(y * g + bt)

    h = mlpln(x @ params["in_w"] + params["in_b"],
              params["in_cw"], params["in_cb"], params["in_g"], params["in_bt"])
    L = params["lw_h"].shape[0]
    for l in range(L):
        y = h @ params["lw_h"][l] + x @ params["lw_x"][l] + params["lb"][l]
        h = mlpln(y, params["lcw"][l], params["lcb"][l], params["lg"][l], params["lbt"][l])
    return h @ params["out_wh"] + x @ params["out_wx"] + params["out_b"]


# ----------------------------- params ---------------------------------------

def _uniform(key, shape, scale):
    return jax.random.uniform(key, shape, minval=-scale, maxval=scale, dtype=jnp.float32)


def init_params(key, channels, hid_channels, num_layers, time_emb_channels):
    """Initializes parameters matching torch.nn.Linear default init.

    Skip-layer weights of logical shape [(C+H), H] are generated directly in split form
    (W_h: [H,H], W_x: [C,H]) with the combined fan_in (C+H) init scale, so the pair is
    distributed exactly like the corresponding torch weight.
    """
    C, H, TE = channels, hid_channels, time_emb_channels
    L = num_layers - 2
    assert L >= 1, "num_layers must be >= 3"

    # Exact key budget: 8 (time_embed + in_layer) + 5 per middle layer + 3 (out_layer).
    n_keys = 8 + 5 * L + 3
    keys = iter(jax.random.split(key, n_keys))
    nxt = lambda: next(keys)

    def linear(fan_in, fan_out, scale_fan_in=None):
        s = 1.0 / math.sqrt(scale_fan_in if scale_fan_in is not None else fan_in)
        return _uniform(nxt(), (fan_in, fan_out), s), _uniform(nxt(), (1, fan_out), s)

    te_w1, te_b1 = linear(TE, C)
    te_w2, te_b2 = linear(C, C)

    in_w, in_b = linear(C, H)
    in_cw, in_cb = linear(C, H)

    lw_h, lw_x, lb, lcw, lcb = [], [], [], [], []
    s_skip = 1.0 / math.sqrt(C + H)
    for _ in range(L):
        lw_h.append(_uniform(nxt(), (H, H), s_skip))
        lw_x.append(_uniform(nxt(), (C, H), s_skip))
        lb.append(_uniform(nxt(), (1, H), s_skip))
        cw, cb = linear(C, H)
        lcw.append(cw)
        lcb.append(cb)

    out_wh = _uniform(nxt(), (H, C), s_skip)
    out_wx = _uniform(nxt(), (C, C), s_skip)
    out_b = _uniform(nxt(), (1, C), s_skip)

    stack = lambda xs: jnp.stack(xs, axis=0)
    return dict(
        time_emb_channels=TE,
        te_w1=te_w1, te_b1=te_b1, te_w2=te_w2, te_b2=te_b2,
        in_w=in_w, in_b=in_b, in_cw=in_cw, in_cb=in_cb,
        in_g=jnp.ones((1, H), jnp.float32), in_bt=jnp.zeros((1, H), jnp.float32),
        lw_h=stack(lw_h), lw_x=stack(lw_x), lb=stack(lb),
        lcw=stack(lcw), lcb=stack(lcb),
        lg=jnp.ones((L, 1, H), jnp.float32), lbt=jnp.zeros((L, 1, H), jnp.float32),
        out_wh=out_wh, out_wx=out_wx, out_b=out_b,
    )


# ----------------------------- main ------------------------------------------

if __name__ == "__main__":
    channels = 16
    hid_channels = 32
    num_layers = 4           # -> 2 middle skip layers
    time_emb_channels = 64
    batch = 8                # multiple of 8 sublanes

    key = jax.random.PRNGKey(0)
    pkey, xkey, tkey = jax.random.split(key, 3)

    params = init_params(pkey, channels, hid_channels, num_layers, time_emb_channels)
    x = jax.random.normal(xkey, (batch, channels), dtype=jnp.float32)
    t = jax.random.randint(tkey, (batch,), 0, 1000).astype(jnp.float32)

    out = jax.block_until_ready(mlp_skip_net(params, x, t))
    ref = jax.block_until_ready(mlp_skip_net_reference(params, x, t))

    assert out.shape == (batch, channels), out.shape
    assert bool(jnp.all(jnp.isfinite(out)))
    assert bool(jnp.max(jnp.abs(out - ref)) < 1e-3), float(jnp.max(jnp.abs(out - ref)))
    print("KERNEL_OK")
</pallas_src>

<mosaic_0001>
module attributes {stable_mosaic.version = 11 : i64} {
  func.func @fused_mlp_skip_kernel(%arg0: memref<8x16xf32, #tpu.memory_space<vmem>>, %arg1: memref<8x64xf32, #tpu.memory_space<vmem>>, %arg2: memref<64x16xf32, #tpu.memory_space<vmem>>, %arg3: memref<1x16xf32, #tpu.memory_space<vmem>>, %arg4: memref<16x16xf32, #tpu.memory_space<vmem>>, %arg5: memref<1x16xf32, #tpu.memory_space<vmem>>, %arg6: memref<16x32xf32, #tpu.memory_space<vmem>>, %arg7: memref<1x32xf32, #tpu.memory_space<vmem>>, %arg8: memref<16x32xf32, #tpu.memory_space<vmem>>, %arg9: memref<1x32xf32, #tpu.memory_space<vmem>>, %arg10: memref<1x32xf32, #tpu.memory_space<vmem>>, %arg11: memref<1x32xf32, #tpu.memory_space<vmem>>, %arg12: memref<2x32x32xf32, #tpu.memory_space<vmem>>, %arg13: memref<2x16x32xf32, #tpu.memory_space<vmem>>, %arg14: memref<2x1x32xf32, #tpu.memory_space<vmem>>, %arg15: memref<2x16x32xf32, #tpu.memory_space<vmem>>, %arg16: memref<2x1x32xf32, #tpu.memory_space<vmem>>, %arg17: memref<2x1x32xf32, #tpu.memory_space<vmem>>, %arg18: memref<2x1x32xf32, #tpu.memory_space<vmem>>, %arg19: memref<32x16xf32, #tpu.memory_space<vmem>>, %arg20: memref<16x16xf32, #tpu.memory_space<vmem>>, %arg21: memref<1x16xf32, #tpu.memory_space<vmem>>, %arg22: memref<8x16xf32, #tpu.memory_space<vmem>>) attributes {dimension_semantics = [], scalar_prefetch = 0 : i64, scratch_operands = 0 : i64, tpu.core_type = #tpu.core_type<tc>} {
    %c0 = arith.constant 0 : index
    %c0_0 = arith.constant 0 : index
    %0 = vector.load %arg0[%c0, %c0_0] : memref<8x16xf32, #tpu.memory_space<vmem>>, vector<8x16xf32>
    %c0_1 = arith.constant 0 : index
    %c0_2 = arith.constant 0 : index
    %1 = vector.load %arg1[%c0_1, %c0_2] : memref<8x64xf32, #tpu.memory_space<vmem>>, vector<8x64xf32>
    %c0_3 = arith.constant 0 : index
    %c0_4 = arith.constant 0 : index
    %2 = vector.load %arg2[%c0_3, %c0_4] : memref<64x16xf32, #tpu.memory_space<vmem>>, vector<64x16xf32>
    %cst = arith.constant dense<0.000000e+00> : vector<8x16xf32>
    %3 = tpu.matmul %1, %2, %cst {dimension_numbers = #tpu.dot_dimension_numbers<[1], [0], [0], [1], [0, 0, 1, 1], [], []>, precision = #tpu.contract_precision<fp32>} : vector<8x64xf32>, vector<64x16xf32>, vector<8x16xf32> -> vector<8x16xf32>
    %c0_5 = arith.constant 0 : index
    %c0_6 = arith.constant 0 : index
    %4 = vector.load %arg3[%c0_5, %c0_6] : memref<1x16xf32, #tpu.memory_space<vmem>>, vector<1x16xf32>
    %5 = vector.broadcast %4 : vector<1x16xf32> to vector<8x16xf32>
    %6 = arith.addf %3, %5 : vector<8x16xf32>
    %cst_7 = arith.constant 5.000000e-01 : f32
    %7 = vector.broadcast %cst_7 : f32 to vector<8x16xf32>
    %8 = arith.mulf %7, %6 : vector<8x16xf32>
    %cst_8 = arith.constant 0.707106769 : f32
    %9 = vector.broadcast %cst_8 : f32 to vector<8x16xf32>
    %10 = arith.mulf %6, %9 : vector<8x16xf32>
    %11 = math.erf %10 : vector<8x16xf32>
    %cst_9 = arith.constant 1.000000e+00 : f32
    %12 = vector.broadcast %cst_9 : f32 to vector<8x16xf32>
    %13 = arith.addf %12, %11 : vector<8x16xf32>
    %14 = arith.mulf %8, %13 : vector<8x16xf32>
    %c0_10 = arith.constant 0 : index
    %c0_11 = arith.constant 0 : index
    %15 = vector.load %arg4[%c0_10, %c0_11] : memref<16x16xf32, #tpu.memory_space<vmem>>, vector<16x16xf32>
    %cst_12 = arith.constant dense<0.000000e+00> : vector<8x16xf32>
    %16 = tpu.matmul %14, %15, %cst_12 {dimension_numbers = #tpu.dot_dimension_numbers<[1], [0], [0], [1], [0, 0, 1, 1], [], []>, precision = #tpu.contract_precision<fp32>} : vector<8x16xf32>, vector<16x16xf32>, vector<8x16xf32> -> vector<8x16xf32>
    %c0_13 = arith.constant 0 : index
    %c0_14 = arith.constant 0 : index
    %17 = vector.load %arg5[%c0_13, %c0_14] : memref<1x16xf32, #tpu.memory_space<vmem>>, vector<1x16xf32>
    %18 = vector.broadcast %17 : vector<1x16xf32> to vector<8x16xf32>
    %19 = arith.addf %16, %18 : vector<8x16xf32>
    %cst_15 = arith.constant 5.000000e-01 : f32
    %20 = vector.broadcast %cst_15 : f32 to vector<8x16xf32>
    %21 = arith.mulf %20, %19 : vector<8x16xf32>
    %cst_16 = arith.constant 0.707106769 : f32
    %22 = vector.broadcast %cst_16 : f32 to vector<8x16xf32>
    %23 = arith.mulf %19, %22 : vector<8x16xf32>
    %24 = math.erf %23 : vector<8x16xf32>
    %cst_17 = arith.constant 1.000000e+00 : f32
    %25 = vector.broadcast %cst_17 : f32 to vector<8x16xf32>
    %26 = arith.addf %25, %24 : vector<8x16xf32>
    %27 = arith.mulf %21, %26 : vector<8x16xf32>
    %c0_18 = arith.constant 0 : index
    %c0_19 = arith.constant 0 : index
    %28 = vector.load %arg6[%c0_18, %c0_19] : memref<16x32xf32, #tpu.memory_space<vmem>>, vector<16x32xf32>
    %cst_20 = arith.constant dense<0.000000e+00> : vector<8x32xf32>
    %29 = tpu.matmul %0, %28, %cst_20 {dimension_numbers = #tpu.dot_dimension_numbers<[1], [0], [0], [1], [0, 0, 1, 1], [], []>, precision = #tpu.contract_precision<fp32>} : vector<8x16xf32>, vector<16x32xf32>, vector<8x32xf32> -> vector<8x32xf32>
    %c0_21 = arith.constant 0 : index
    %c0_22 = arith.constant 0 : index
    %30 = vector.load %arg7[%c0_21, %c0_22] : memref<1x32xf32, #tpu.memory_space<vmem>>, vector<1x32xf32>
    %31 = vector.broadcast %30 : vector<1x32xf32> to vector<8x32xf32>
    %32 = arith.addf %29, %31 : vector<8x32xf32>
    %c0_23 = arith.constant 0 : index
    %c0_24 = arith.constant 0 : index
    %33 = vector.load %arg8[%c0_23, %c0_24] : memref<16x32xf32, #tpu.memory_space<vmem>>, vector<16x32xf32>
    %c0_25 = arith.constant 0 : index
    %c0_26 = arith.constant 0 : index
    %34 = vector.load %arg9[%c0_25, %c0_26] : memref<1x32xf32, #tpu.memory_space<vmem>>, vector<1x32xf32>
    %c0_27 = arith.constant 0 : index
    %c0_28 = arith.constant 0 : index
    %35 = vector.load %arg10[%c0_27, %c0_28] : memref<1x32xf32, #tpu.memory_space<vmem>>, vector<1x32xf32>
    %c0_29 = arith.constant 0 : index
    %c0_30 = arith.constant 0 : index
    %36 = vector.load %arg11[%c0_29, %c0_30] : memref<1x32xf32, #tpu.memory_space<vmem>>, vector<1x32xf32>
    %cst_31 = arith.constant dense<0.000000e+00> : vector<8x32xf32>
    %37 = tpu.matmul %27, %33, %cst_31 {dimension_numbers = #tpu.dot_dimension_numbers<[1], [0], [0], [1], [0, 0, 1, 1], [], []>, precision = #tpu.contract_precision<fp32>} : vector<8x16xf32>, vector<16x32xf32>, vector<8x32xf32> -> vector<8x32xf32>
    %38 = vector.broadcast %34 : vector<1x32xf32> to vector<8x32xf32>
    %39 = arith.addf %37, %38 : vector<8x32xf32>
    %cst_32 = arith.constant 1.000000e+00 : f32
    %40 = vector.broadcast %cst_32 : f32 to vector<8x32xf32>
    %41 = arith.addf %40, %39 : vector<8x32xf32>
    %42 = arith.mulf %32, %41 : vector<8x32xf32>
    %cst_33 = arith.constant dense<0.000000e+00> : vector<8xf32>
    %43 = vector.multi_reduction <add>, %42, %cst_33 [1] : vector<8x32xf32> to vector<8xf32>
    %44 = vector.shape_cast %43 : vector<8xf32> to vector<8x1xf32>
    %cst_34 = arith.constant 3.200000e+01 : f32
    %45 = vector.broadcast %cst_34 : f32 to vector<8x1xf32>
    %46 = arith.divf %44, %45 : vector<8x1xf32>
    %47 = vector.broadcast %46 : vector<8x1xf32> to vector<8x32xf32>
    %48 = arith.subf %42, %47 : vector<8x32xf32>
    %49 = arith.mulf %48, %48 : vector<8x32xf32>
    %cst_35 = arith.constant dense<0.000000e+00> : vector<8xf32>
    %50 = vector.multi_reduction <add>, %49, %cst_35 [1] : vector<8x32xf32> to vector<8xf32>
    %51 = vector.shape_cast %50 : vector<8xf32> to vector<8x1xf32>
    %cst_36 = arith.constant 3.200000e+01 : f32
    %52 = vector.broadcast %cst_36 : f32 to vector<8x1xf32>
    %53 = arith.divf %51, %52 : vector<8x1xf32>
    %54 = vector.broadcast %46 : vector<8x1xf32> to vector<8x32xf32>
    %55 = arith.subf %42, %54 : vector<8x32xf32>
    %cst_37 = arith.constant 9.99999974E-6 : f32
    %56 = vector.broadcast %cst_37 : f32 to vector<8x1xf32>
    %57 = arith.addf %53, %56 : vector<8x1xf32>
    %58 = math.rsqrt %57 : vector<8x1xf32>
    %59 = vector.broadcast %58 : vector<8x1xf32> to vector<8x32xf32>
    %60 = arith.mulf %55, %59 : vector<8x32xf32>
    %61 = vector.broadcast %35 : vector<1x32xf32> to vector<8x32xf32>
    %62 = arith.mulf %60, %61 : vector<8x32xf32>
    %63 = vector.broadcast %36 : vector<1x32xf32> to vector<8x32xf32>
    %64 = arith.addf %62, %63 : vector<8x32xf32>
    %cst_38 = arith.constant 5.000000e-01 : f32
    %65 = vector.broadcast %cst_38 : f32 to vector<8x32xf32>
    %66 = arith.mulf %65, %64 : vector<8x32xf32>
    %cst_39 = arith.constant 0.707106769 : f32
    %67 = vector.broadcast %cst_39 : f32 to vector<8x32xf32>
    %68 = arith.mulf %64, %67 : vector<8x32xf32>
    %69 = math.erf %68 : vector<8x32xf32>
    %cst_40 = arith.constant 1.000000e+00 : f32
    %70 = vector.broadcast %cst_40 : f32 to vector<8x32xf32>
    %71 = arith.addf %70, %69 : vector<8x32xf32>
    %72 = arith.mulf %66, %71 : vector<8x32xf32>
    %c0_41 = arith.constant 0 : index
    %c0_42 = arith.constant 0 : index
    %c0_43 = arith.constant 0 : index
    %73 = vector.load %arg12[%c0_41, %c0_42, %c0_43] : memref<2x32x32xf32, #tpu.memory_space<vmem>>, vector<1x32x32xf32>
    %74 = vector.shape_cast %73 : vector<1x32x32xf32> to vector<32x32xf32>
    %cst_44 = arith.constant dense<0.000000e+00> : vector<8x32xf32>
    %75 = tpu.matmul %72, %74, %cst_44 {dimension_numbers = #tpu.dot_dimension_numbers<[1], [0], [0], [1], [0, 0, 1, 1], [], []>, precision = #tpu.contract_precision<fp32>} : vector<8x32xf32>, vector<32x32xf32>, vector<8x32xf32> -> vector<8x32xf32>
    %c0_45 = arith.constant 0 : index
    %c0_46 = arith.constant 0 : index
    %c0_47 = arith.constant 0 : index
    %76 = vector.load %arg13[%c0_45, %c0_46, %c0_47] : memref<2x16x32xf32, #tpu.memory_space<vmem>>, vector<1x16x32xf32>
    %77 = vector.shape_cast %76 : vector<1x16x32xf32> to vector<16x32xf32>
    %cst_48 = arith.constant dense<0.000000e+00> : vector<8x32xf32>
    %78 = tpu.matmul %0, %77, %cst_48 {dimension_numbers = #tpu.dot_dimension_numbers<[1], [0], [0], [1], [0, 0, 1, 1], [], []>, precision = #tpu.contract_precision<fp32>} : vector<8x16xf32>, vector<16x32xf32>, vector<8x32xf32> -> vector<8x32xf32>
    %79 = arith.addf %75, %78 : vector<8x32xf32>
    %c0_49 = arith.constant 0 : index
    %c0_50 = arith.constant 0 : index
    %c0_51 = arith.constant 0 : index
    %80 = vector.load %arg14[%c0_49, %c0_50, %c0_51] : memref<2x1x32xf32, #tpu.memory_space<vmem>>, vector<1x1x32xf32>
    %81 = vector.shape_cast %80 : vector<1x1x32xf32> to vector<1x32xf32>
    %82 = vector.broadcast %81 : vector<1x32xf32> to vector<8x32xf32>
    %83 = arith.addf %79, %82 : vector<8x32xf32>
    %c0_52 = arith.constant 0 : index
    %c0_53 = arith.constant 0 : index
    %c0_54 = arith.constant 0 : index
    %84 = vector.load %arg15[%c0_52, %c0_53, %c0_54] : memref<2x16x32xf32, #tpu.memory_space<vmem>>, vector<1x16x32xf32>
    %85 = vector.shape_cast %84 : vector<1x16x32xf32> to vector<16x32xf32>
    %c0_55 = arith.constant 0 : index
    %c0_56 = arith.constant 0 : index
    %c0_57 = arith.constant 0 : index
    %86 = vector.load %arg16[%c0_55, %c0_56, %c0_57] : memref<2x1x32xf32, #tpu.memory_space<vmem>>, vector<1x1x32xf32>
    %87 = vector.shape_cast %86 : vector<1x1x32xf32> to vector<1x32xf32>
    %c0_58 = arith.constant 0 : index
    %c0_59 = arith.constant 0 : index
    %c0_60 = arith.constant 0 : index
    %88 = vector.load %arg17[%c0_58, %c0_59, %c0_60] : memref<2x1x32xf32, #tpu.memory_space<vmem>>, vector<1x1x32xf32>
    %89 = vector.shape_cast %88 : vector<1x1x32xf32> to vector<1x32xf32>
    %c0_61 = arith.constant 0 : index
    %c0_62 = arith.constant 0 : index
    %c0_63 = arith.constant 0 : index
    %90 = vector.load %arg18[%c0_61, %c0_62, %c0_63] : memref<2x1x32xf32, #tpu.memory_space<vmem>>, vector<1x1x32xf32>
    %91 = vector.shape_cast %90 : vector<1x1x32xf32> to vector<1x32xf32>
    %cst_64 = arith.constant dense<0.000000e+00> : vector<8x32xf32>
    %92 = tpu.matmul %27, %85, %cst_64 {dimension_numbers = #tpu.dot_dimension_numbers<[1], [0], [0], [1], [0, 0, 1, 1], [], []>, precision = #tpu.contract_precision<fp32>} : vector<8x16xf32>, vector<16x32xf32>, vector<8x32xf32> -> vector<8x32xf32>
    %93 = vector.broadcast %87 : vector<1x32xf32> to vector<8x32xf32>
    %94 = arith.addf %92, %93 : vector<8x32xf32>
    %cst_65 = arith.constant 1.000000e+00 : f32
    %95 = vector.broadcast %cst_65 : f32 to vector<8x32xf32>
    %96 = arith.addf %95, %94 : vector<8x32xf32>
    %97 = arith.mulf %83, %96 : vector<8x32xf32>
    %cst_66 = arith.constant dense<0.000000e+00> : vector<8xf32>
    %98 = vector.multi_reduction <add>, %97, %cst_66 [1] : vector<8x32xf32> to vector<8xf32>
    %99 = vector.shape_cast %98 : vector<8xf32> to vector<8x1xf32>
    %cst_67 = arith.constant 3.200000e+01 : f32
    %100 = vector.broadcast %cst_67 : f32 to vector<8x1xf32>
    %101 = arith.divf %99, %100 : vector<8x1xf32>
    %102 = vector.broadcast %101 : vector<8x1xf32> to vector<8x32xf32>
    %103 = arith.subf %97, %102 : vector<8x32xf32>
    %104 = arith.mulf %103, %103 : vector<8x32xf32>
    %cst_68 = arith.constant dense<0.000000e+00> : vector<8xf32>
    %105 = vector.multi_reduction <add>, %104, %cst_68 [1] : vector<8x32xf32> to vector<8xf32>
    %106 = vector.shape_cast %105 : vector<8xf32> to vector<8x1xf32>
    %cst_69 = arith.constant 3.200000e+01 : f32
    %107 = vector.broadcast %cst_69 : f32 to vector<8x1xf32>
    %108 = arith.divf %106, %107 : vector<8x1xf32>
    %109 = vector.broadcast %101 : vector<8x1xf32> to vector<8x32xf32>
    %110 = arith.subf %97, %109 : vector<8x32xf32>
    %cst_70 = arith.constant 9.99999974E-6 : f32
    %111 = vector.broadcast %cst_70 : f32 to vector<8x1xf32>
    %112 = arith.addf %108, %111 : vector<8x1xf32>
    %113 = math.rsqrt %112 : vector<8x1xf32>
    %114 = vector.broadcast %113 : vector<8x1xf32> to vector<8x32xf32>
    %115 = arith.mulf %110, %114 : vector<8x32xf32>
    %116 = vector.broadcast %89 : vector<1x32xf32> to vector<8x32xf32>
    %117 = arith.mulf %115, %116 : vector<8x32xf32>
    %118 = vector.broadcast %91 : vector<1x32xf32> to vector<8x32xf32>
    %119 = arith.addf %117, %118 : vector<8x32xf32>
    %cst_71 = arith.constant 5.000000e-01 : f32
    %120 = vector.broadcast %cst_71 : f32 to vector<8x32xf32>
    %121 = arith.mulf %120, %119 : vector<8x32xf32>
    %cst_72 = arith.constant 0.707106769 : f32
    %122 = vector.broadcast %cst_72 : f32 to vector<8x32xf32>
    %123 = arith.mulf %119, %122 : vector<8x32xf32>
    %124 = math.erf %123 : vector<8x32xf32>
    %cst_73 = arith.constant 1.000000e+00 : f32
    %125 = vector.broadcast %cst_73 : f32 to vector<8x32xf32>
    %126 = arith.addf %125, %124 : vector<8x32xf32>
    %127 = arith.mulf %121, %126 : vector<8x32xf32>
    %c1 = arith.constant 1 : index
    %c0_74 = arith.constant 0 : index
    %c0_75 = arith.constant 0 : index
    %128 = vector.load %arg12[%c1, %c0_74, %c0_75] : memref<2x32x32xf32, #tpu.memory_space<vmem>>, vector<1x32x32xf32>
    %129 = vector.shape_cast %128 : vector<1x32x32xf32> to vector<32x32xf32>
    %cst_76 = arith.constant dense<0.000000e+00> : vector<8x32xf32>
    %130 = tpu.matmul %127, %129, %cst_76 {dimension_numbers = #tpu.dot_dimension_numbers<[1], [0], [0], [1], [0, 0, 1, 1], [], []>, precision = #tpu.contract_precision<fp32>} : vector<8x32xf32>, vector<32x32xf32>, vector<8x32xf32> -> vector<8x32xf32>
    %c1_77 = arith.constant 1 : index
    %c0_78 = arith.constant 0 : index
    %c0_79 = arith.constant 0 : index
    %131 = vector.load %arg13[%c1_77, %c0_78, %c0_79] : memref<2x16x32xf32, #tpu.memory_space<vmem>>, vector<1x16x32xf32>
    %132 = vector.shape_cast %131 : vector<1x16x32xf32> to vector<16x32xf32>
    %cst_80 = arith.constant dense<0.000000e+00> : vector<8x32xf32>
    %133 = tpu.matmul %0, %132, %cst_80 {dimension_numbers = #tpu.dot_dimension_numbers<[1], [0], [0], [1], [0, 0, 1, 1], [], []>, precision = #tpu.contract_precision<fp32>} : vector<8x16xf32>, vector<16x32xf32>, vector<8x32xf32> -> vector<8x32xf32>
    %134 = arith.addf %130, %133 : vector<8x32xf32>
    %c1_81 = arith.constant 1 : index
    %c0_82 = arith.constant 0 : index
    %c0_83 = arith.constant 0 : index
    %135 = vector.load %arg14[%c1_81, %c0_82, %c0_83] : memref<2x1x32xf32, #tpu.memory_space<vmem>>, vector<1x1x32xf32>
    %136 = vector.shape_cast %135 : vector<1x1x32xf32> to vector<1x32xf32>
    %137 = vector.broadcast %136 : vector<1x32xf32> to vector<8x32xf32>
    %138 = arith.addf %134, %137 : vector<8x32xf32>
    %c1_84 = arith.constant 1 : index
    %c0_85 = arith.constant 0 : index
    %c0_86 = arith.constant 0 : index
    %139 = vector.load %arg15[%c1_84, %c0_85, %c0_86] : memref<2x16x32xf32, #tpu.memory_space<vmem>>, vector<1x16x32xf32>
    %140 = vector.shape_cast %139 : vector<1x16x32xf32> to vector<16x32xf32>
    %c1_87 = arith.constant 1 : index
    %c0_88 = arith.constant 0 : index
    %c0_89 = arith.constant 0 : index
    %141 = vector.load %arg16[%c1_87, %c0_88, %c0_89] : memref<2x1x32xf32, #tpu.memory_space<vmem>>, vector<1x1x32xf32>
    %142 = vector.shape_cast %141 : vector<1x1x32xf32> to vector<1x32xf32>
    %c1_90 = arith.constant 1 : index
    %c0_91 = arith.constant 0 : index
    %c0_92 = arith.constant 0 : index
    %143 = vector.load %arg17[%c1_90, %c0_91, %c0_92] : memref<2x1x32xf32, #tpu.memory_space<vmem>>, vector<1x1x32xf32>
    %144 = vector.shape_cast %143 : vector<1x1x32xf32> to vector<1x32xf32>
    %c1_93 = arith.constant 1 : index
    %c0_94 = arith.constant 0 : index
    %c0_95 = arith.constant 0 : index
    %145 = vector.load %arg18[%c1_93, %c0_94, %c0_95] : memref<2x1x32xf32, #tpu.memory_space<vmem>>, vector<1x1x32xf32>
    %146 = vector.shape_cast %145 : vector<1x1x32xf32> to vector<1x32xf32>
    %cst_96 = arith.constant dense<0.000000e+00> : vector<8x32xf32>
    %147 = tpu.matmul %27, %140, %cst_96 {dimension_numbers = #tpu.dot_dimension_numbers<[1], [0], [0], [1], [0, 0, 1, 1], [], []>, precision = #tpu.contract_precision<fp32>} : vector<8x16xf32>, vector<16x32xf32>, vector<8x32xf32> -> vector<8x32xf32>
    %148 = vector.broadcast %142 : vector<1x32xf32> to vector<8x32xf32>
    %149 = arith.addf %147, %148 : vector<8x32xf32>
    %cst_97 = arith.constant 1.000000e+00 : f32
    %150 = vector.broadcast %cst_97 : f32 to vector<8x32xf32>
    %151 = arith.addf %150, %149 : vector<8x32xf32>
    %152 = arith.mulf %138, %151 : vector<8x32xf32>
    %cst_98 = arith.constant dense<0.000000e+00> : vector<8xf32>
    %153 = vector.multi_reduction <add>, %152, %cst_98 [1] : vector<8x32xf32> to vector<8xf32>
    %154 = vector.shape_cast %153 : vector<8xf32> to vector<8x1xf32>
    %cst_99 = arith.constant 3.200000e+01 : f32
    %155 = vector.broadcast %cst_99 : f32 to vector<8x1xf32>
    %156 = arith.divf %154, %155 : vector<8x1xf32>
    %157 = vector.broadcast %156 : vector<8x1xf32> to vector<8x32xf32>
    %158 = arith.subf %152, %157 : vector<8x32xf32>
    %159 = arith.mulf %158, %158 : vector<8x32xf32>
    %cst_100 = arith.constant dense<0.000000e+00> : vector<8xf32>
    %160 = vector.multi_reduction <add>, %159, %cst_100 [1] : vector<8x32xf32> to vector<8xf32>
    %161 = vector.shape_cast %160 : vector<8xf32> to vector<8x1xf32>
    %cst_101 = arith.constant 3.200000e+01 : f32
    %162 = vector.broadcast %cst_101 : f32 to vector<8x1xf32>
    %163 = arith.divf %161, %162 : vector<8x1xf32>
    %164 = vector.broadcast %156 : vector<8x1xf32> to vector<8x32xf32>
    %165 = arith.subf %152, %164 : vector<8x32xf32>
    %cst_102 = arith.constant 9.99999974E-6 : f32
    %166 = vector.broadcast %cst_102 : f32 to vector<8x1xf32>
    %167 = arith.addf %163, %166 : vector<8x1xf32>
    %168 = math.rsqrt %167 : vector<8x1xf32>
    %169 = vector.broadcast %168 : vector<8x1xf32> to vector<8x32xf32>
    %170 = arith.mulf %165, %169 : vector<8x32xf32>
    %171 = vector.broadcast %144 : vector<1x32xf32> to vector<8x32xf32>
    %172 = arith.mulf %170, %171 : vector<8x32xf32>
    %173 = vector.broadcast %146 : vector<1x32xf32> to vector<8x32xf32>
    %174 = arith.addf %172, %173 : vector<8x32xf32>
    %cst_103 = arith.constant 5.000000e-01 : f32
    %175 = vector.broadcast %cst_103 : f32 to vector<8x32xf32>
    %176 = arith.mulf %175, %174 : vector<8x32xf32>
    %cst_104 = arith.constant 0.707106769 : f32
    %177 = vector.broadcast %cst_104 : f32 to vector<8x32xf32>
    %178 = arith.mulf %174, %177 : vector<8x32xf32>
    %179 = math.erf %178 : vector<8x32xf32>
    %cst_105 = arith.constant 1.000000e+00 : f32
    %180 = vector.broadcast %cst_105 : f32 to vector<8x32xf32>
    %181 = arith.addf %180, %179 : vector<8x32xf32>
    %182 = arith.mulf %176, %181 : vector<8x32xf32>
    %c0_106 = arith.constant 0 : index
    %c0_107 = arith.constant 0 : index
    %183 = vector.load %arg19[%c0_106, %c0_107] : memref<32x16xf32, #tpu.memory_space<vmem>>, vector<32x16xf32>
    %cst_108 = arith.constant dense<0.000000e+00> : vector<8x16xf32>
    %184 = tpu.matmul %182, %183, %cst_108 {dimension_numbers = #tpu.dot_dimension_numbers<[1], [0], [0], [1], [0, 0, 1, 1], [], []>, precision = #tpu.contract_precision<fp32>} : vector<8x32xf32>, vector<32x16xf32>, vector<8x16xf32> -> vector<8x16xf32>
    %c0_109 = arith.constant 0 : index
    %c0_110 = arith.constant 0 : index
    %185 = vector.load %arg20[%c0_109, %c0_110] : memref<16x16xf32, #tpu.memory_space<vmem>>, vector<16x16xf32>
    %cst_111 = arith.constant dense<0.000000e+00> : vector<8x16xf32>
    %186 = tpu.matmul %0, %185, %cst_111 {dimension_numbers = #tpu.dot_dimension_numbers<[1], [0], [0], [1], [0, 0, 1, 1], [], []>, precision = #tpu.contract_precision<fp32>} : vector<8x16xf32>, vector<16x16xf32>, vector<8x16xf32> -> vector<8x16xf32>
    %187 = arith.addf %184, %186 : vector<8x16xf32>
    %c0_112 = arith.constant 0 : index
    %c0_113 = arith.constant 0 : index
    %188 = vector.load %arg21[%c0_112, %c0_113] : memref<1x16xf32, #tpu.memory_space<vmem>>, vector<1x16xf32>
    %189 = vector.broadcast %188 : vector<1x16xf32> to vector<8x16xf32>
    %190 = arith.addf %187, %189 : vector<8x16xf32>
    %c0_114 = arith.constant 0 : index
    %c0_115 = arith.constant 0 : index
    %191 = vector.load %arg22[%c0_114, %c0_115] : memref<8x16xf32, #tpu.memory_space<vmem>>, vector<8x16xf32>
    tpu.vector_store %arg22[%c0_114, %c0_115], %190 {strides = array<i32>} : memref<8x16xf32, #tpu.memory_space<vmem>>, vector<8x16xf32>,
    return
  }
}

</mosaic_0001>

<bundles_post_ra>
// kernel: tpu_custom_call.1
= control target key start
LH: loop header
LB: loop body
LE: loop exit
PB: predicated region body
PF: predicated region fallthrough
CT: control target
= control target key end

     0   :  { %s8664_s0 = inlined_call_operand.hbm [shape: f32[8,16], index: 0, kind: input, shape index: {}]   ;;  %s8665_s1 = inlined_call_operand.hbm [shape: f32[8,64], index: 1, kind: input, shape index: {}]   ;;  %s8666_s2 = inlined_call_operand.vmem [shape: f32[64,16], index: 2, kind: input, shape index: {}]   ;;  %s8667_s3 = inlined_call_operand.hbm [shape: f32[1,16], index: 3, kind: input, shape index: {}]   ;;  %s8668_s4 = inlined_call_operand.hbm [shape: f32[16,16], index: 4, kind: input, shape index: {}]   ;;  %s8669_s5 = inlined_call_operand.hbm [shape: f32[1,16], index: 5, kind: input, shape index: {}]   ;;  %s8670_s6 = inlined_call_operand.hbm [shape: f32[16,32], index: 6, kind: input, shape index: {}]   ;;  %s8671_s7 = inlined_call_operand.hbm [shape: f32[1,32], index: 7, kind: input, shape index: {}]   ;;  %s8672_s8 = inlined_call_operand.hbm [shape: f32[16,32], index: 8, kind: input, shape index: {}]   ;;  %s8673_s9 = inlined_call_operand.hbm [shape: f32[1,32], index: 9, kind: input, shape index: {}]   ;;  %s8674_s10 = inlined_call_operand.vmem [shape: f32[1,32], index: 10, kind: input, shape index: {}]   ;;  %s8675_s11 = inlined_call_operand.hbm [shape: f32[1,32], index: 11, kind: input, shape index: {}]   ;;  %s8676_s12 = inlined_call_operand.vmem [shape: f32[2,32,32], index: 12, kind: input, shape index: {}]   ;;  %s8677_s13 = inlined_call_operand.vmem [shape: f32[2,16,32], index: 13, kind: input, shape index: {}]   ;;  %s8678_s14 = inlined_call_operand.vmem [shape: f32[2,1,32], index: 14, kind: input, shape index: {}]   ;;  %s8679_s15 = inlined_call_operand.vmem [shape: f32[2,16,32], index: 15, kind: input, shape index: {}]   ;;  %s8680_s16 = inlined_call_operand.vmem [shape: f32[2,1,32], index: 16, kind: input, shape index: {}]   ;;  %s8681_s17 = inlined_call_operand.vmem [shape: f32[2,1,32], index: 17, kind: input, shape index: {}]   ;;  %s8682_s18 = inlined_call_operand.vmem [shape: f32[2,1,32], index: 18, kind: input, shape index: {}]   ;;  %s8683_s19 = inlined_call_operand.vmem [shape: f32[32,16], index: 19, kind: input, shape index: {}]   ;;  %s8684_s20 = inlined_call_operand.vmem [shape: f32[16,16], index: 20, kind: input, shape index: {}]   ;;  %s8685_s21 = inlined_call_operand.vmem [shape: f32[1,16], index: 21, kind: input, shape index: {}]   ;;  %s8686_s22 = inlined_call_operand.hbm [shape: f32[8,16], index: 22, kind: output, shape index: {}]  }
   0x1   :  { %8696 = sst [smem:[#allocation27_spill]] %s8664_s0 }
   0x2   :  { %8697 = sst [smem:[#allocation28_spill]] %s8665_s1 }
   0x3   :  { %8698 = sst [smem:[#allocation29_spill]] %s8666_s2 }
   0x4   :  { %8699 = sst [smem:[#allocation30_spill]] %s8667_s3 }
   0x5   :  { %8700 = sst [smem:[#allocation31_spill]] %s8668_s4 }
   0x6   :  { %8701 = sst [smem:[#allocation32_spill]] %s8669_s5 }
   0x7   :  { %8702 = sst [smem:[#allocation33_spill]] %s8670_s6 }
   0x8   :  { %8703 = sst [smem:[#allocation34_spill]] %s8683_s19 }
   0x9   :  { %8704 = sst [smem:[#allocation35_spill]] %s8685_s21 }
   0xa   :  { %8705 = sst [smem:[#allocation36_spill]] %s8686_s22 }
   0xb   :  { %27 = vsyncpa [#allocation3], 0 }
   0xc   :  { %28 = vsyncpa [#allocation6], 0 }
   0xd   :  { %29 = vsyncpa [#allocation9], 0 }
   0xe   :  { %30 = vsyncpa [#allocation12], 0 }
   0xf   :  { %31 = vsyncpa [#allocation15], 0 }
  0x10   :  { %32 = vsyncpa [#allocation18], 0 }
  0x11   :  { %33 = vsyncpa [#allocation4], 0  ;;  %s7741_s3 = smov [#allocation5]   ;;  %s7742_s29 = smov [#allocation8]  }
  0x12   :  { %s50_s28 = sshll.u32 %s7741_s3, 4  ;;  %s71_s30 = sshll.u32 %s7742_s29, 4  ;;  %s51_s28 = int_to_ptr.vmem [resolvable:$true] %s50_s28  ;;  %s7872_s30 = int_to_ptr.vmem [resolvable:$true] %s71_s30 }
  0x13   :  { %s8706_s23 = sld [smem:[#allocation28_spill]] }
  0x19   :  { %s7485_s1 = scalar_lea.hbm %s8706_s23, 128 }
  0x1a   :  { %p7486_p0 = scmp.ne.s32.totalorder %s8706_s23, %s7485_s1  ;;  %p7489_p1 = scmp.lt.u32.totalorder %s7485_s1, %s8706_s23 }
  0x1c   :  { %p7491_p2 = pnand %p7489_p1, %p7486_p0 }
  0x1e   :  { %7494 = shalt.err (!%p7491_p2)
}
  0x1f   :  { %s7495_s26 = scalar_lea.vmem %s51_s28, 128  ;;  %p7500_p4 = scmp.lt.s32.totalorder %s51_s28, %s51_s28 }
  0x20   :  { %p7496_p3 = scmp.ne.s32.totalorder %s51_s28, %s7495_s26  ;;  %p7501_p5 = scmp.lt.s32.totalorder %s7495_s26, %s7495_s26 }
  0x22   :  { %p7502_p6 = por %p7501_p5, %p7500_p4 }
  0x24   :  { %p7503_p7 = pnand %p7502_p6, %p7496_p3 }
  0x26   :  { %7506 = shalt.err (!%p7503_p7)
}
  0x27   :  { %53 = dma.hbm_to_vmem [thread:$0]  %s8706_s23, 128, %s51_s28, [#allocation6]  }
  0x28   :  { %s8707_s4 = sld [smem:[#allocation31_spill]] }
  0x2e   :  { %s7507_s0 = scalar_lea.hbm %s8707_s4, 256 }
  0x2f   :  { %p7508_p8 = scmp.ne.s32.totalorder %s8707_s4, %s7507_s0  ;;  %p7511_p9 = scmp.lt.u32.totalorder %s7507_s0, %s8707_s4 }
  0x31   :  { %p7513_p10 = pnand %p7511_p9, %p7508_p8 }
  0x33   :  { %7516 = shalt.err (!%p7513_p10)
}
  0x34   :  { %s7517_s25 = scalar_lea.vmem %s7872_s30, 256  ;;  %p7522_p12 = scmp.lt.s32.totalorder %s7872_s30, %s7872_s30 }
  0x35   :  { %p7518_p11 = scmp.ne.s32.totalorder %s7872_s30, %s7517_s25  ;;  %p7523_p13 = scmp.lt.s32.totalorder %s7517_s25, %s7517_s25 }
  0x37   :  { %p7524_p0 = por %p7523_p13, %p7522_p12 }
  0x39   :  { %p7525_p1 = pnand %p7524_p0, %p7518_p11 }
  0x3b   :  { %7528 = shalt.err (!%p7525_p1)
}
  0x3c   :  { %s7743_s28 = smov 128   ;;  %s7744_s23 = smov 8  }
  0x3d   :  { %77 = dma.hbm_to_vmem [thread:$0]  %s8707_s4, 256, %s7872_s30, [#allocation9], %s7743_s28, %s7743_s28, %s7744_s23  }
  0x3e   :  { %s7745_s27 = smov [#allocation11]   ;;  %s7746_s29 = smov [#allocation14]  }
  0x3f   :  { %s93_s3 = sshll.u32 %s7745_s27, 4  ;;  %s115_s0 = sshll.u32 %s7746_s29, 4  ;;  %s94_s3 = int_to_ptr.vmem [resolvable:$true] %s93_s3  ;;  %s7906_s0 = int_to_ptr.vmem [resolvable:$true] %s115_s0 }
  0x40   :  { %s8708_s1 = sld [smem:[#allocation33_spill]] }
  0x46   :  { %s7529_s6 = scalar_lea.hbm %s8708_s1, 256 }
  0x47   :  { %p7530_p2 = scmp.ne.s32.totalorder %s8708_s1, %s7529_s6  ;;  %p7533_p3 = scmp.lt.u32.totalorder %s7529_s6, %s8708_s1 }
  0x49   :  { %p7535_p4 = pnand %p7533_p3, %p7530_p2 }
  0x4b   :  { %7538 = shalt.err (!%p7535_p4)
}
  0x4c   :  { %s7539_s30 = scalar_lea.vmem %s94_s3, 256  ;;  %p7544_p6 = scmp.lt.s32.totalorder %s94_s3, %s94_s3 }
  0x4d   :  { %p7540_p5 = scmp.ne.s32.totalorder %s94_s3, %s7539_s30  ;;  %p7545_p7 = scmp.lt.s32.totalorder %s7539_s30, %s7539_s30 }
  0x4f   :  { %p7546_p8 = por %p7545_p7, %p7544_p6 }
  0x51   :  { %p7547_p9 = pnand %p7546_p8, %p7540_p5 }
  0x53   :  { %7550 = shalt.err (!%p7547_p9)
}
  0x54   :  { %99 = dma.hbm_to_vmem [thread:$0]  %s8708_s1, 256, %s94_s3, [#allocation12], %s7743_s28, %s7743_s28, %s7744_s23  }
  0x55   :  { %s7551_s19 = scalar_lea.hbm %s8672_s8, 256 }
  0x56   :  { %p7552_p10 = scmp.ne.s32.totalorder %s8672_s8, %s7551_s19  ;;  %p7555_p11 = scmp.lt.u32.totalorder %s7551_s19, %s8672_s8 }
  0x58   :  { %p7557_p12 = pnand %p7555_p11, %p7552_p10 }
  0x5a   :  { %7560 = shalt.err (!%p7557_p12)
}
  0x5b   :  { %s7561_s24 = scalar_lea.vmem %s7906_s0, 256  ;;  %p7566_p0 = scmp.lt.s32.totalorder %s7906_s0, %s7906_s0 }
  0x5c   :  { %p7562_p13 = scmp.ne.s32.totalorder %s7906_s0, %s7561_s24  ;;  %p7567_p1 = scmp.lt.s32.totalorder %s7561_s24, %s7561_s24 }
  0x5e   :  { %p7568_p2 = por %p7567_p1, %p7566_p0 }
  0x60   :  { %p7569_p3 = pnand %p7568_p2, %p7562_p13 }
  0x62   :  { %7572 = shalt.err (!%p7569_p3)
}
  0x63   :  { %121 = dma.hbm_to_vmem [thread:$0]  %s8672_s8, 256, %s7906_s0, [#allocation15], %s7743_s28, %s7743_s28, %s7744_s23  }
  0x64   :  { %s7747_s6 = smov [#allocation2]   ;;  %s7748_s30 = smov [#allocation7]  }
  0x65   :  { %s40_s25 = sshll.u32 %s7747_s6, 4  ;;  %s62_s4 = sshll.u32 %s7748_s30, 4  ;;  %s41_s25 = int_to_ptr.vmem [resolvable:$true] %s40_s25  ;;  %s63_s4 = int_to_ptr.vmem [resolvable:$true] %s62_s4 }
  0x66   :  { %s8709_s2 = sld [smem:[#allocation27_spill]] }
  0x6c   :  { %s7573_s19 = scalar_lea.hbm %s8709_s2, 128 }
  0x6d   :  { %p7574_p4 = scmp.ne.s32.totalorder %s8709_s2, %s7573_s19  ;;  %p7577_p5 = scmp.lt.u32.totalorder %s7573_s19, %s8709_s2 }
  0x6f   :  { %p7579_p6 = pnand %p7577_p5, %p7574_p4 }
  0x71   :  { %7582 = shalt.err (!%p7579_p6)
}
  0x72   :  { %s7583_s8 = scalar_lea.vmem %s41_s25, 128  ;;  %p7588_p8 = scmp.lt.s32.totalorder %s41_s25, %s41_s25 }
  0x73   :  { %p7584_p7 = scmp.ne.s32.totalorder %s41_s25, %s7583_s8  ;;  %p7589_p9 = scmp.lt.s32.totalorder %s7583_s8, %s7583_s8 }
  0x75   :  { %p7590_p10 = por %p7589_p9, %p7588_p8 }
  0x77   :  { %p7591_p11 = pnand %p7590_p10, %p7584_p7 }
  0x79   :  { %7594 = shalt.err (!%p7591_p11)
}
  0x7a   :  { %43 = dma.hbm_to_vmem [thread:$0]  %s8709_s2, 128, %s41_s25, [#allocation3]  }
  0x7b   :  { %s8710_s3 = sld [smem:[#allocation30_spill]] }
  0x81   :  { %s7595_s1 = scalar_lea.hbm %s8710_s3, 16 }
  0x82   :  { %p7596_p12 = scmp.ne.s32.totalorder %s8710_s3, %s7595_s1  ;;  %p7599_p13 = scmp.lt.u32.totalorder %s7595_s1, %s8710_s3 }
  0x84   :  { %p7601_p0 = pnand %p7599_p13, %p7596_p12 }
  0x86   :  { %7604 = shalt.err (!%p7601_p0)
}
  0x87   :  { %s7605_s19 = scalar_lea.vmem %s63_s4, 16  ;;  %s7609_s21 = scalar_lea.vmem %s63_s4, 32 }
  0x88   :  { %p7606_p1 = scmp.ne.s32.totalorder %s63_s4, %s7605_s19  ;;  %p7610_p2 = scmp.lt.s32.totalorder %s63_s4, %s63_s4 }
  0x89   :  { %p7611_p3 = scmp.lt.s32.totalorder %s7609_s21, %s7605_s19 }
  0x8b   :  { %p7612_p4 = por %p7611_p3, %p7610_p2 }
  0x8d   :  { %p7613_p5 = pnand %p7612_p4, %p7606_p1 }
  0x8f   :  { %7616 = shalt.err (!%p7613_p5)
}
  0x90   :  { %65 = dma.hbm_to_vmem [thread:$0]  %s8710_s3, 16, %s63_s4, [#allocation6]  }
  0x91   :  { %s7749_s27 = smov [#allocation10]   ;;  %s7750_s5 = smov [#allocation13]  }
  0x92   :  { %s84_s29 = sshll.u32 %s7749_s27, 4  ;;  %s106_s8 = sshll.u32 %s7750_s5, 4  ;;  %s85_s29 = int_to_ptr.vmem [resolvable:$true] %s84_s29  ;;  %s107_s8 = int_to_ptr.vmem [resolvable:$true] %s106_s8 }
  0x93   :  { %s8711_s0 = sld [smem:[#allocation32_spill]] }
  0x99   :  { %s7617_s24 = scalar_lea.hbm %s8711_s0, 16 }
  0x9a   :  { %p7618_p6 = scmp.ne.s32.totalorder %s8711_s0, %s7617_s24  ;;  %p7621_p7 = scmp.lt.u32.totalorder %s7617_s24, %s8711_s0 }
  0x9c   :  { %p7623_p8 = pnand %p7621_p7, %p7618_p6 }
  0x9e   :  { %7626 = shalt.err (!%p7623_p8)
}
  0x9f   :  { %s7627_s4 = scalar_lea.vmem %s85_s29, 16  ;;  %s7631_s3 = scalar_lea.vmem %s85_s29, 32 }
  0xa0   :  { %p7628_p9 = scmp.ne.s32.totalorder %s85_s29, %s7627_s4  ;;  %p7632_p10 = scmp.lt.s32.totalorder %s85_s29, %s85_s29 }
  0xa1   :  { %p7633_p11 = scmp.lt.s32.totalorder %s7631_s3, %s7627_s4 }
  0xa3   :  { %p7634_p12 = por %p7633_p11, %p7632_p10 }
  0xa5   :  { %p7635_p13 = pnand %p7634_p12, %p7628_p9 }
  0xa7   :  { %7638 = shalt.err (!%p7635_p13)
}
  0xa8   :  { %87 = dma.hbm_to_vmem [thread:$0]  %s8711_s0, 16, %s85_s29, [#allocation9]  }
  0xa9   :  { %s7639_s2 = scalar_lea.hbm %s8671_s7, 16 }
  0xaa   :  { %p7640_p0 = scmp.ne.s32.totalorder %s8671_s7, %s7639_s2  ;;  %p7643_p1 = scmp.lt.u32.totalorder %s7639_s2, %s8671_s7 }
  0xac   :  { %p7645_p2 = pnand %p7643_p1, %p7640_p0 }
  0xae   :  { %7648 = shalt.err (!%p7645_p2)
}
  0xaf   :  { %s7649_s24 = scalar_lea.vmem %s107_s8, 16  ;;  %s7653_s1 = scalar_lea.vmem %s107_s8, 32 }
  0xb0   :  { %p7650_p3 = scmp.ne.s32.totalorder %s107_s8, %s7649_s24  ;;  %p7654_p4 = scmp.lt.s32.totalorder %s107_s8, %s107_s8 }
  0xb1   :  { %p7655_p5 = scmp.lt.s32.totalorder %s7653_s1, %s7649_s24 }
  0xb3   :  { %p7656_p6 = por %p7655_p5, %p7654_p4 }
  0xb5   :  { %p7657_p7 = pnand %p7656_p6, %p7650_p3 }
  0xb7   :  { %7660 = shalt.err (!%p7657_p7)
}
  0xb8   :  { %109 = dma.hbm_to_vmem [thread:$0]  %s8671_s7, 16, %s107_s8, [#allocation12]  }
  0xb9   :  { %s7751_s6 = smov [#allocation16]   ;;  %s7752_s26 = smov [#allocation17]  }
  0xba   :  { %s128_s30 = sshll.u32 %s7751_s6, 4  ;;  %s140_s4 = sshll.u32 %s7752_s26, 4  ;;  %s129_s30 = int_to_ptr.vmem [resolvable:$true] %s128_s30  ;;  %s141_s4 = int_to_ptr.vmem [resolvable:$true] %s140_s4 }
  0xbb   :  { %s7661_s19 = scalar_lea.hbm %s8673_s9, 16 }
  0xbc   :  { %p7662_p8 = scmp.ne.s32.totalorder %s8673_s9, %s7661_s19  ;;  %p7665_p9 = scmp.lt.u32.totalorder %s7661_s19, %s8673_s9 }
  0xbe   :  { %p7667_p10 = pnand %p7665_p9, %p7662_p8 }
  0xc0   :  { %7670 = shalt.err (!%p7667_p10)
}
  0xc1   :  { %s7671_s7 = scalar_lea.vmem %s129_s30, 16  ;;  %s7675_s8 = scalar_lea.vmem %s129_s30, 32 }
  0xc2   :  { %p7672_p11 = scmp.ne.s32.totalorder %s129_s30, %s7671_s7  ;;  %p7676_p12 = scmp.lt.s32.totalorder %s129_s30, %s129_s30 }
  0xc3   :  { %p7677_p13 = scmp.lt.s32.totalorder %s7675_s8, %s7671_s7 }
  0xc5   :  { %p7678_p0 = por %p7677_p13, %p7676_p12 }
  0xc7   :  { %p7679_p1 = pnand %p7678_p0, %p7672_p11 }
  0xc9   :  { %7682 = shalt.err (!%p7679_p1)
}
  0xca   :  { %131 = dma.hbm_to_vmem [thread:$0]  %s8673_s9, 16, %s129_s30, [#allocation15]  }
  0xcb   :  { %s7683_s1 = scalar_lea.hbm %s8675_s11, 16 }
  0xcc   :  { %p7684_p2 = scmp.ne.s32.totalorder %s8675_s11, %s7683_s1  ;;  %p7687_p3 = scmp.lt.u32.totalorder %s7683_s1, %s8675_s11 }
  0xce   :  { %p7689_p4 = pnand %p7687_p3, %p7684_p2 }
  0xd0   :  { %7692 = shalt.err (!%p7689_p4)
}
  0xd1   :  { %s7693_s3 = scalar_lea.vmem %s141_s4, 16  ;;  %s7697_s22 = scalar_lea.vmem %s141_s4, 32 }
  0xd2   :  { %p7694_p5 = scmp.ne.s32.totalorder %s141_s4, %s7693_s3  ;;  %p7698_p6 = scmp.lt.s32.totalorder %s141_s4, %s141_s4 }
  0xd3   :  { %p7699_p7 = scmp.lt.s32.totalorder %s7697_s22, %s7693_s3 }
  0xd5   :  { %p7700_p8 = por %p7699_p7, %p7698_p6 }
  0xd7   :  { %p7701_p9 = pnand %p7700_p8, %p7694_p5 }
  0xd9   :  { %7704 = shalt.err (!%p7701_p9)
}
  0xda   :  { %143 = dma.hbm_to_vmem [thread:$0]  %s8675_s11, 16, %s141_s4, [#allocation18]  }
  0xdb   :  { %7727 = dma.done.wait [#allocation3], 128  }
  0xdc   :  { %7728 = vsyncadd [#allocation3], 4294967168 }
  0xdd   :  { %7729 = dma.done.wait [#allocation6], 144  }
  0xde   :  { %7730 = vsyncadd [#allocation6], 4294967152 }
  0xdf   :  { %7731 = dma.done.wait [#allocation9], 272  }
  0xe0   :  { %7732 = vsyncadd [#allocation9], 4294967024 }
  0xe1   :  { %7733 = dma.done.wait [#allocation12], 272  }
  0xe2   :  { %7734 = vsyncadd [#allocation12], 4294967024 }
  0xe3   :  { %7735 = dma.done.wait [#allocation15], 272  }
  0xe4   :  { %7736 = vsyncadd [#allocation15], 4294967024 }
  0xe5   :  { %7737 = dma.done.wait [#allocation18], 16  }
  0xe6   :  { %7738 = vsyncadd [#allocation18], 4294967280  ;;  %v7753_v0 = vmov 0.0|0.0   ;;  %vm7754_vm0 = vmmov 0   ;;  %v7755_v1 = vmov 0.0   ;;  %s8712_s19 = sld [smem:[#allocation29_spill]] }
  0xe7   :  { %7096 = vmatprep.subr.bf16.mxu0 %v7753_v0  ;;  %6464 = vmatprep.mubr.msk.f32.mxu0 %vm7754_vm0, %v7755_v1  ;;  %v195_v12 = vld [vmem:[#allocation5] sm:$0xff]  ;;  %vm211_vm1 = vcmask 523264   ;;  %vm766_vm2 = vcmask 130048   ;;  %vm2180_vm3 = vcmask 261120   ;;  %s8713_s3 = sld [smem:[#allocation34_spill]]  ;;  %s7756_s2 = smov [#allocation19]  }
  0xe8   :  { %7168 = vmatprep.subr.bf16.mxu1 %v7753_v0  ;;  %6566 = vmatprep.mubr.msk.f32.mxu1 %vm7754_vm0, %v7755_v1  ;;  %v213_v23 = vsel %vm211_vm1, %v195_v12, 0  ;;  %v758_v12 = vld [vmem:[#allocation8 + $0x8] sm:$0xff]  ;;  %s6119_s27 = sshll.u32 %s7756_s2, 4  ;;  %s6120_s27 = int_to_ptr.vmem [resolvable:$true] %s6119_s27 }
  0xe9   :  { %v8059_v24 = vand.u32 4294901760, %v213_v23  ;;  %s7705_s7 = scalar_lea.vmem %s6120_s27, 128  ;;  %p7710_p11 = scmp.lt.s32.totalorder %s6120_s27, %s6120_s27 }
  0xea   :  { %p7706_p10 = scmp.ne.s32.totalorder %s6120_s27, %s7705_s7  ;;  %p7711_p12 = scmp.lt.s32.totalorder %s7705_s7, %s7705_s7 }
  0xeb   :  { %v8066_v30 = vsub.f32 %v213_v23, %v8059_v24 }
  0xec   :  { %v196_v2 = vld [vmem:[%s8712_s19] sm:$0xff]  ;;  %v197_v3 = vld [vmem:[%s8712_s19 + $0x8] sm:$0xff]  ;;  %v198_v4 = vld [vmem:[%s8712_s19 + $0x10] sm:$0xff]  ;;  %p7712_p13 = por %p7711_p12, %p7710_p11 }
  0xed   :  { %v216_v5 = vand.u32 4294901760, %v196_v2  ;;  %v219_v6 = vand.u32 4294901760, %v197_v3  ;;  %v199_v7 = vld [vmem:[%s8712_s19 + $0x18] sm:$0xff]  ;;  %v222_v8 = vand.u32 4294901760, %v198_v4  ;;  %v200_v9 = vld [vmem:[%s8712_s19 + $0x20] sm:$0xff]  ;;  %v201_v10 = vld [vmem:[%s8712_s19 + $0x28] sm:$0xff] }
  0xee   :  { %v225_v11 = vand.u32 4294901760, %v199_v7  ;;  %v228_v18 = vand.u32 4294901760, %v200_v9  ;;  %v231_v19 = vand.u32 4294901760, %v201_v10  ;;  %v202_v20 = vld [vmem:[%s8712_s19 + $0x30] sm:$0xff]  ;;  %v203_v21 = vld [vmem:[%s8712_s19 + $0x38] sm:$0xff]  ;;  %v290_v37 = vand.u32 4294901760, %v8066_v30  ;;  %p7713_p0 = pnand %p7712_p13, %p7706_p10 }
  0xef   :  { %v8039_v13 = vpack.c.bf16 %v219_v6, %v216_v5  ;;  %v8041_v14 = vsub.f32 %v196_v2, %v216_v5  ;;  %v8043_v15 = vsub.f32 %v197_v3, %v219_v6  ;;  %v8045_v16 = vsub.f32 %v198_v4, %v222_v8 }
  0xf0   :  { %v8047_v17 = vsub.f32 %v199_v7, %v225_v11  ;;  %v8056_v22 = vpack.c.bf16 %v225_v11, %v222_v8  ;;  %v234_v27 = vand.u32 4294901760, %v202_v20  ;;  %v237_v28 = vand.u32 4294901760, %v203_v21  ;;  %v757_v11 = vld [vmem:[#allocation8] sm:$0xff] }
  0xf1   :  { %7098 = vmatpush3.bf16.msra.mxu0 %v8039_v13  ;;  %v301_v25 = vand.u32 4294901760, %v8041_v14  ;;  %v308_v26 = vand.u32 4294901760, %v8043_v15  ;;  %v8063_v29 = vpack.c.bf16 %v231_v19, %v228_v18  ;;  %v315_v31 = vand.u32 4294901760, %v8045_v16 }
  0xf2   :  { %7099 = vmatprep.subr.bf16.mxu0 %v7753_v0  ;;  %v322_v32 = vand.u32 4294901760, %v8047_v17  ;;  %v8071_v33 = vsub.f32 %v200_v9, %v228_v18  ;;  %v8073_v34 = vsub.f32 %v201_v10, %v231_v19  ;;  %v8083_v38 = vpack.c.bf16 %v237_v28, %v234_v27 }
  0xf3   :  { %v302_v35 = vsub.f32 %v8041_v14, %v301_v25  ;;  %v309_v36 = vsub.f32 %v8043_v15, %v308_v26  ;;  %v8085_v39 = vsub.f32 %v202_v20, %v234_v27  ;;  %v8087_v40 = vsub.f32 %v203_v21, %v237_v28  ;;  %v6133_v27 = vld [vmem:[#allocation7] ss:$0 sm:$0xff] }
  0xf4   :  { %v291_v41 = vsub.f32 %v8066_v30, %v290_v37  ;;  %v316_v42 = vsub.f32 %v8045_v16, %v315_v31  ;;  %v323_v43 = vsub.f32 %v8047_v17, %v322_v32  ;;  %v329_v46 = vand.u32 4294901760, %v8071_v33 }
  0xf5   :  { %7101 = vmatpush3.bf16.msra.mxu0 %v8056_v22  ;;  %v303_v44 = vand.u32 4294901760, %v302_v35  ;;  %v310_v45 = vand.u32 4294901760, %v309_v36  ;;  %v336_v47 = vand.u32 4294901760, %v8073_v34  ;;  %v343_v51 = vand.u32 4294901760, %v8085_v39 }
  0xf6   :  { %7102 = vmatprep.subr.bf16.mxu0 %v7753_v0  ;;  %v292_v48 = vand.u32 4294901760, %v291_v41  ;;  %v317_v49 = vand.u32 4294901760, %v316_v42  ;;  %v324_v50 = vand.u32 4294901760, %v323_v43  ;;  %v330_v53 = vsub.f32 %v8071_v33, %v329_v46  ;;  %v194_v42 = vld [vmem:[#allocation2] sm:$0xff] }
  0xf7   :  { %v7109_v52 = vpack.c.bf16 %v310_v45, %v303_v44  ;;  %v337_v54 = vsub.f32 %v8073_v34, %v336_v47  ;;  %v350_v55 = vand.u32 4294901760, %v8087_v40  ;;  %v344_v56 = vsub.f32 %v8085_v39, %v343_v51  ;;  %v1234_v43 = vld [vmem:[#allocation11] sm:$0xff]  ;;  %v1235_v44 = vld [vmem:[#allocation11 + $0x8] sm:$0xff] }
  0xf8   :  { %v7112_v57 = vpack.c.bf16 %v324_v50, %v317_v49  ;;  %v331_v58 = vand.u32 4294901760, %v330_v53  ;;  %v7121_v3 = vpack.c.bf16 %v8043_v15, %v8041_v14  ;;  %v7124_v4 = vpack.c.bf16 %v8047_v17, %v8045_v16 }
  0xf9   :  { %7104 = vmatpush3.bf16.msra.mxu0 %v8063_v29  ;;  %v338_v59 = vand.u32 4294901760, %v337_v54  ;;  %v351_v60 = vsub.f32 %v8087_v40, %v350_v55  ;;  %v345_v62 = vand.u32 4294901760, %v344_v56  ;;  %v7127_v5 = vpack.c.bf16 %v8073_v34, %v8071_v33 }
  0xfa   :  { %7105 = vmatprep.subr.bf16.mxu0 %v7753_v0  ;;  %v7130_v6 = vpack.c.bf16 %v8087_v40, %v8085_v39  ;;  %v7145_v7 = vpack.c.bf16 %v308_v26, %v301_v25  ;;  %v7148_v8 = vpack.c.bf16 %v322_v32, %v315_v31  ;;  %v7151_v9 = vpack.c.bf16 %v336_v47, %v329_v46 }
  0xfb   :  { %v7115_v61 = vpack.c.bf16 %v338_v59, %v331_v58  ;;  %v352_v63 = vand.u32 4294901760, %v351_v60  ;;  %v7154_v10 = vpack.c.bf16 %v350_v55, %v343_v51  ;;  %v774_v14 = vand.u32 4294901760, %v758_v12 }
  0xfc   :  { %v1244_v45 = vsel %vm766_vm2, %v194_v42, 0  ;;  %v1247_v46 = vand.u32 4294901760, %v1234_v43  ;;  %v1250_v47 = vand.u32 4294901760, %v1235_v44 }
  0xfd   :  { %7107 = vmatpush3.bf16.msra.mxu0 %v8083_v38  ;;  %v7118_v2 = vpack.c.bf16 %v352_v63, %v345_v62  ;;  %v856_v17 = vsub.f32 %v758_v12, %v774_v14 }
  0xfe   :  { %7108 = vmatprep.subr.bf16.mxu0 %v7753_v0  ;;  %v1325_v49 = vsub.f32 %v1234_v43, %v1247_v46  ;;  %v1332_v50 = vsub.f32 %v1235_v44, %v1250_v47  ;;  %v7187_v58 = vpack.c.bf16 %v1250_v47, %v1247_v46 }
  0xff   :  { %v857_v19 = vand.u32 4294901760, %v856_v17 }
 0x100   :  { %6465 = vmatmul.mubr.f32.vlgmr.msra.gmra.mrb[0].mxu0 %v292_v48  ;;  %v8188_v48 = vand.u32 4294901760, %v1244_v45  ;;  %v1333_v53 = vand.u32 4294901760, %v1332_v50  ;;  %v7193_v63 = vpack.c.bf16 %v1332_v50, %v1325_v49 }
 0x101   :  { %7110 = vmatpush3.bf16.msra.mxu0 %v7109_v52  ;;  %6483 = vmatprep.mubr.msk.f32.mxu0 %vm7754_vm0, %v7755_v1  ;;  %v858_v21 = vsub.f32 %v856_v17, %v857_v19  ;;  %v1326_v52 = vand.u32 4294901760, %v1325_v49 }
 0x102   :  { %7111 = vmatprep.subr.bf16.mxu0 %v7753_v0  ;;  %v8194_v51 = vsub.f32 %v1244_v45, %v8188_v48  ;;  %v1334_v56 = vsub.f32 %v1332_v50, %v1333_v53 }
 0x103   :  { %v859_v23 = vand.u32 4294901760, %v858_v21  ;;  %v1327_v55 = vsub.f32 %v1325_v49, %v1326_v52 }
 0x104   :  { %v8197_v54 = vand.u32 4294901760, %v8194_v51  ;;  %v1335_v60 = vand.u32 4294901760, %v1334_v56 }
 0x105   :  { %7113 = vmatpush3.bf16.msra.mxu0 %v7112_v57  ;;  %v1328_v59 = vand.u32 4294901760, %v1327_v55  ;;  %v6135_v55 = vld [vmem:[#allocation13] ss:$0 sm:$0xff] }
 0x106   :  { %7114 = vmatprep.subr.bf16.mxu0 %v7753_v0  ;;  %v1316_v57 = vsub.f32 %v8194_v51, %v8197_v54 }
 0x107   :  { %v7190_v62 = vpack.c.bf16 %v1335_v60, %v1328_v59 }
 0x109   :  { %7116 = vmatpush3.bf16.msra.mxu0 %v7115_v61  ;;  %v8204_v61 = vand.u32 4294901760, %v1316_v57 }
 0x10a   :  { %7117 = vmatprep.subr.bf16.mxu0 %v7753_v0 }
 0x10d   :  { %7119 = vmatpush3.bf16.msra.mxu0 %v7118_v2  ;;  %v7199_v2 = vpack.c.bf16 %v1333_v53, %v1326_v52 }
 0x10e   :  { %7120 = vmatprep.subr.bf16.mxu0 %v7753_v0 }
 0x110   :  { %6484 = vmatmul.mubr.f32.vlgmr.msra.gmra.mrb[0].mxu0 %v8059_v24 }
 0x111   :  { %7122 = vmatpush3.bf16.msra.mxu0 %v7121_v3  ;;  %6502 = vmatprep.mubr.msk.f32.mxu0 %vm7754_vm0, %v7755_v1  ;;  %v1705_v3 = vld [vmem:[#allocation14] sm:$0xff] }
 0x112   :  { %7123 = vmatprep.subr.bf16.mxu0 %v7753_v0 }
 0x115   :  { %7125 = vmatpush3.bf16.msra.mxu0 %v7124_v4  ;;  %v1706_v4 = vld [vmem:[#allocation14 + $0x8] sm:$0xff] }
 0x116   :  { %7126 = vmatprep.subr.bf16.mxu0 %v7753_v0 }
 0x119   :  { %7128 = vmatpush3.bf16.msra.mxu0 %v7127_v5  ;;  %v1720_v5 = vand.u32 4294901760, %v1705_v3 }
 0x11a   :  { %7129 = vmatprep.subr.bf16.mxu0 %v7753_v0 }
 0x11d   :  { %7131 = vmatpush3.bf16.msra.mxu0 %v7130_v6  ;;  %v1723_v6 = vand.u32 4294901760, %v1706_v4 }
 0x11e   :  { %7132 = vmatprep.subr.bf16.mxu0 %v7753_v0 }
 0x120   :  { %6503 = vmatmul.mubr.f32.vlgmr.msra.gmra.mrb[0].mxu0 %v8066_v30 }
 0x121   :  { %7134 = vmatpush3.bf16.msra.mxu0 %v8039_v13  ;;  %6521 = vmatprep.mubr.msk.f32.mxu0 %vm7754_vm0, %v7755_v1 }
 0x122   :  { %7135 = vmatprep.subr.bf16.mxu0 %v7753_v0 }
 0x125   :  { %7137 = vmatpush3.bf16.msra.mxu0 %v8056_v22 }
 0x126   :  { %7138 = vmatprep.subr.bf16.mxu0 %v7753_v0 }
 0x129   :  { %7140 = vmatpush3.bf16.msra.mxu0 %v8063_v29 }
 0x12a   :  { %7141 = vmatprep.subr.bf16.mxu0 %v7753_v0 }
 0x12d   :  { %7143 = vmatpush3.bf16.msra.mxu0 %v8083_v38 }
 0x12e   :  { %7144 = vmatprep.subr.bf16.mxu0 %v7753_v0 }
 0x130   :  { %6522 = vmatmul.mubr.f32.vlgmr.msra.gmra.mrb[0].mxu0 %v290_v37 }
 0x131   :  { %7146 = vmatpush3.bf16.msra.mxu0 %v7145_v7  ;;  %6540 = vmatprep.mubr.msk.f32.mxu0 %vm7754_vm0, %v7755_v1  ;;  %v1798_v7 = vsub.f32 %v1705_v3, %v1720_v5 }
 0x132   :  { %7147 = vmatprep.subr.bf16.mxu0 %v7753_v0 }
 0x135   :  { %7149 = vmatpush3.bf16.msra.mxu0 %v7148_v8  ;;  %v1805_v8 = vsub.f32 %v1706_v4, %v1723_v6 }
 0x136   :  { %7150 = vmatprep.subr.bf16.mxu0 %v7753_v0 }
 0x139   :  { %7152 = vmatpush3.bf16.msra.mxu0 %v7151_v9  ;;  %v7205_v9 = vpack.c.bf16 %v1723_v6, %v1720_v5 }
 0x13a   :  { %7153 = vmatprep.subr.bf16.mxu0 %v7753_v0 }
 0x13d   :  { %7155 = vmatpush3.bf16.msra.mxu0 %v7154_v10  ;;  %v1799_v10 = vand.u32 4294901760, %v1798_v7 }
 0x13e   :  { %7156 = vmatprep.subr.bf16.mxu0 %v7753_v0 }
 0x13f   :  { %v1800_v12 = vsub.f32 %v1798_v7, %v1799_v10 }
 0x140   :  { %6541 = vmatmul.mubr.f32.vlgmr.msra.gmra.mrb[0].mxu0 %v8059_v24 }
 0x141   :  { %7158 = vmatpush3.bf16.msra.mxu0 %v8039_v13  ;;  %6559 = vmatprep.mubr.msk.f32.mxu0 %vm7754_vm0, %v7755_v1  ;;  %v771_v13 = vand.u32 4294901760, %v757_v11 }
 0x142   :  { %7159 = vmatprep.subr.bf16.mxu0 %v7753_v0 }
 0x143   :  { %v7169_v15 = vpack.c.bf16 %v774_v14, %v771_v13  ;;  %v849_v16 = vsub.f32 %v757_v11, %v771_v13  ;;  %v1806_v11 = vand.u32 4294901760, %v1805_v8  ;;  %v1801_v14 = vand.u32 4294901760, %v1800_v12 }
 0x145   :  { %7161 = vmatpush3.bf16.msra.mxu0 %v8056_v22  ;;  %7170 = vmatpush3.bf16.msra.mxu1 %v7169_v15  ;;  %v850_v18 = vand.u32 4294901760, %v849_v16  ;;  %v7175_v25 = vpack.c.bf16 %v856_v17, %v849_v16  ;;  %v1807_v13 = vsub.f32 %v1805_v8, %v1806_v11  ;;  %v7211_v17 = vpack.c.bf16 %v1805_v8, %v1798_v7  ;;  %v2218_v7 = vld [vmem:[%s8677_s13] sm:$0xff]  ;;  %v2219_v8 = vld [vmem:[%s8677_s13 + $0x8] sm:$0xff] }
 0x146   :  { %7162 = vmatprep.subr.bf16.mxu0 %v7753_v0  ;;  %7171 = vmatprep.subr.bf16.mxu1 %v7753_v0 }
 0x147   :  { %v851_v20 = vsub.f32 %v849_v16, %v850_v18  ;;  %v7181_v26 = vpack.c.bf16 %v857_v19, %v850_v18  ;;  %v7217_v18 = vpack.c.bf16 %v1806_v11, %v1799_v10  ;;  %v6134_v19 = vld [vmem:[#allocation10] ss:$0 sm:$0xff]  ;;  %v2224_v10 = vand.u32 4294901760, %v2219_v8 }
 0x149   :  { %7164 = vmatpush3.bf16.msra.mxu0 %v8063_v29  ;;  %v852_v22 = vand.u32 4294901760, %v851_v20  ;;  %v2306_v12 = vsub.f32 %v2219_v8, %v2224_v10  ;;  %v6138_v8 = vld [vmem:[#allocation17] ss:$0 sm:$0xff] }
 0x14a   :  { %7165 = vmatprep.subr.bf16.mxu0 %v7753_v0 }
 0x14d   :  { %7167 = vmatpush3.bf16.msra.mxu0 %v8083_v38 }
 0x14e   :  { %7240 = vmatprep.subr.bf16.mxu0 %v7753_v0 }
 0x150   :  { %6560 = vmatmul.mubr.f32.vlgmr.msra.gmra.mrb[0].mxu0 %v8059_v24  ;;  %v7172_v24 = vpack.c.bf16 %v859_v23, %v852_v22 }
 0x151   :  { %6738 = vmatprep.mubr.msk.f32.mxu0 %vm7754_vm0, %v7755_v1 }
 0x223   :  { %v748_v28 = vpop.f32.mrb[0].mxu0 }
 0x224   :  { %v7420_v29 = vadd.f32 %v6133_v27, %v748_v28  ;;  %v6561_v30 = vpop.f32.mrb[1].mxu0 }
 0x226   :  { %v753_v31 = vmul.f32 0.70710677, %v7420_v29  ;;  %v752_v33 = vmul.f32 0.5, %v7420_v29 }
 0x228   :  { %7469 = verf.f32 %v753_v31 }
 0x232   :  { %v7470_v32 = vpop.eup %7469 }
 0x233   :  { %v755_v34 = vadd.f32 1.0, %v7470_v32 }
 0x235   :  { %v756_v35 = vmul.f32 %v755_v34, %v752_v33 }
 0x237   :  { %v768_v36 = vsel %vm766_vm2, %v756_v35, 0 }
 0x238   :  { %v837_v37 = vand.u32 4294901760, %v768_v36 }
 0x23a   :  { %v838_v38 = vsub.f32 %v768_v36, %v837_v37  ;;  %v6136_v36 = vld [vmem:[#allocation16] ss:$0 sm:$0xff] }
 0x23c   :  { %v839_v39 = vand.u32 4294901760, %v838_v38 }
 0x23e   :  { %v840_v40 = vsub.f32 %v838_v38, %v839_v39 }
 0x240   :  { %v841_v41 = vand.u32 4294901760, %v840_v40 }
 0x242   :  { %6567 = vmatmul.mubr.f32.vlgmr.msra.gmra.mrb[0].mxu1 %v841_v41 }
 0x243   :  { %7173 = vmatpush3.bf16.msra.mxu1 %v7172_v24  ;;  %6573 = vmatprep.mubr.msk.f32.mxu1 %vm7754_vm0, %v7755_v1 }
 0x244   :  { %7174 = vmatprep.subr.bf16.mxu1 %v7753_v0 }
 0x24a   :  { %6574 = vmatmul.mubr.f32.vlgmr.msra.gmra.mrb[0].mxu1 %v837_v37 }
 0x24b   :  { %7176 = vmatpush3.bf16.msra.mxu1 %v7175_v25  ;;  %6580 = vmatprep.mubr.msk.f32.mxu1 %vm7754_vm0, %v7755_v1 }
 0x24c   :  { %7177 = vmatprep.subr.bf16.mxu1 %v7753_v0 }
 0x252   :  { %6581 = vmatmul.mubr.f32.vlgmr.msra.gmra.mrb[0].mxu1 %v838_v38 }
 0x253   :  { %7179 = vmatpush3.bf16.msra.mxu1 %v7169_v15  ;;  %6587 = vmatprep.mubr.msk.f32.mxu1 %vm7754_vm0, %v7755_v1 }
 0x254   :  { %7180 = vmatprep.subr.bf16.mxu1 %v7753_v0 }
 0x25a   :  { %6588 = vmatmul.mubr.f32.vlgmr.msra.gmra.mrb[0].mxu1 %v839_v39 }
 0x25b   :  { %7182 = vmatpush3.bf16.msra.mxu1 %v7181_v26  ;;  %6594 = vmatprep.mubr.msk.f32.mxu1 %vm7754_vm0, %v7755_v1 }
 0x25c   :  { %7183 = vmatprep.subr.bf16.mxu1 %v7753_v0 }
 0x262   :  { %6595 = vmatmul.mubr.f32.vlgmr.msra.gmra.mrb[0].mxu1 %v837_v37 }
 0x263   :  { %7185 = vmatpush3.bf16.msra.mxu1 %v7169_v15  ;;  %6601 = vmatprep.mubr.msk.f32.mxu1 %vm7754_vm0, %v7755_v1  ;;  %v1808_v15 = vand.u32 4294901760, %v1807_v13 }
 0x264   :  { %7186 = vmatprep.subr.bf16.mxu1 %v7753_v0 }
 0x265   :  { %v7208_v16 = vpack.c.bf16 %v1808_v15, %v1801_v14  ;;  %v2307_v14 = vand.u32 4294901760, %v2306_v12 }
 0x26a   :  { %6602 = vmatmul.mubr.f32.vlgmr.msra.gmra.mrb[0].mxu1 %v837_v37 }
 0x26b   :  { %7188 = vmatpush3.bf16.msra.mxu1 %v7187_v58  ;;  %6608 = vmatprep.mubr.msk.f32.mxu1 %vm7754_vm0, %v7755_v1 }
 0x26c   :  { %7189 = vmatprep.subr.bf16.mxu1 %v7753_v0 }
 0x26e   :  { %6609 = vmatmul.mubr.f32.vlgmr.msra.gmra.mrb[2].mxu1 %v8204_v61 }
 0x26f   :  { %7191 = vmatpush3.bf16.msra.mxu1 %v7190_v62  ;;  %6615 = vmatprep.mubr.msk.f32.mxu1 %vm7754_vm0, %v7755_v1 }
 0x270   :  { %7192 = vmatprep.subr.bf16.mxu1 %v7753_v0 }
 0x276   :  { %6616 = vmatmul.mubr.f32.vlgmr.msra.gmra.mrb[2].mxu1 %v8188_v48 }
 0x277   :  { %7194 = vmatpush3.bf16.msra.mxu1 %v7193_v63  ;;  %6622 = vmatprep.mubr.msk.f32.mxu1 %vm7754_vm0, %v7755_v1 }
 0x278   :  { %7195 = vmatprep.subr.bf16.mxu1 %v7753_v0 }
 0x27e   :  { %6623 = vmatmul.mubr.f32.vlgmr.msra.gmra.mrb[2].mxu1 %v8194_v51 }
 0x27f   :  { %7197 = vmatpush3.bf16.msra.mxu1 %v7187_v58  ;;  %6629 = vmatprep.mubr.msk.f32.mxu1 %vm7754_vm0, %v7755_v1 }
 0x280   :  { %7198 = vmatprep.subr.bf16.mxu1 %v7753_v0 }
 0x286   :  { %6630 = vmatmul.mubr.f32.vlgmr.msra.gmra.mrb[2].mxu1 %v8197_v54 }
 0x287   :  { %7200 = vmatpush3.bf16.msra.mxu1 %v7199_v2  ;;  %6636 = vmatprep.mubr.msk.f32.mxu1 %vm7754_vm0, %v7755_v1 }
 0x288   :  { %7201 = vmatprep.subr.bf16.mxu1 %v7753_v0 }
 0x28e   :  { %6637 = vmatmul.mubr.f32.vlgmr.msra.gmra.mrb[2].mxu1 %v8188_v48 }
 0x28f   :  { %7203 = vmatpush3.bf16.msra.mxu1 %v7187_v58  ;;  %6643 = vmatprep.mubr.msk.f32.mxu1 %vm7754_vm0, %v7755_v1 }
 0x290   :  { %7204 = vmatprep.subr.bf16.mxu1 %v7753_v0 }
 0x296   :  { %6644 = vmatmul.mubr.f32.vlgmr.msra.gmra.mrb[2].mxu1 %v8188_v48 }
 0x297   :  { %6650 = vmatprep.mubr.msk.f32.mxu1 %vm7754_vm0, %v7755_v1  ;;  %7206 = vmatpush3.bf16.msra.mxu1 %v7205_v9 }
 0x298   :  { %7207 = vmatprep.subr.bf16.mxu1 %v7753_v0 }
 0x33d   :  { %v1225_v20 = vpop.f32.mrb[0].mxu1 }
 0x33e   :  { %v7421_v21 = vadd.f32 %v6134_v19, %v1225_v20  ;;  %v6603_v22 = vpop.f32.mrb[1].mxu1 }
 0x33f   :  { %v2214_v22 = vld [vmem:[%s8676_s12] sm:$0xff] }
 0x340   :  { %v1230_v23 = vmul.f32 0.70710677, %v7421_v21  ;;  %v1229_v25 = vmul.f32 0.5, %v7421_v21 }
 0x342   :  { %7471 = verf.f32 %v1230_v23  ;;  %v2215_v23 = vld [vmem:[%s8676_s12 + $0x8] sm:$0xff] }
 0x34c   :  { %v7472_v24 = vpop.eup %7471 }
 0x34d   :  { %v1232_v26 = vadd.f32 1.0, %v7472_v24  ;;  %v2216_v24 = vld [vmem:[%s8676_s12 + $0x10] sm:$0xff] }
 0x34f   :  { %v1233_v27 = vmul.f32 %v1232_v26, %v1229_v25  ;;  %v2683_v25 = vand.u32 4294901760, %v2214_v22  ;;  %v2686_v26 = vand.u32 4294901760, %v2215_v23 }
 0x351   :  { %v1717_v28 = vsel %vm766_vm2, %v1233_v27, 0  ;;  %v2217_v27 = vld [vmem:[%s8676_s12 + $0x18] sm:$0xff] }
 0x352   :  { %v8234_v29 = vand.u32 4294901760, %v1717_v28 }
 0x354   :  { %v8237_v30 = vsub.f32 %v1717_v28, %v8234_v29  ;;  %v2689_v28 = vand.u32 4294901760, %v2216_v24 }
 0x356   :  { %v8240_v31 = vand.u32 4294901760, %v8237_v30 }
 0x358   :  { %v1789_v32 = vsub.f32 %v8237_v30, %v8240_v31 }
 0x35a   :  { %v8244_v33 = vand.u32 4294901760, %v1789_v32 }
 0x35c   :  { %6651 = vmatmul.mubr.f32.vlgmr.msra.gmra.mrb[4].mxu1 %v8244_v33 }
 0x35d   :  { %7209 = vmatpush3.bf16.msra.mxu1 %v7208_v16  ;;  %6657 = vmatprep.mubr.msk.f32.mxu1 %vm7754_vm0, %v7755_v1 }
 0x35e   :  { %7210 = vmatprep.subr.bf16.mxu1 %v7753_v0 }
 0x360   :  { %6658 = vmatmul.mubr.f32.vlgmr.msra.gmra.mrb[6].mxu1 %v8234_v29 }
 0x361   :  { %7212 = vmatpush3.bf16.msra.mxu1 %v7211_v17  ;;  %6664 = vmatprep.mubr.msk.f32.mxu1 %vm7754_vm0, %v7755_v1  ;;  %v2308_v17 = vsub.f32 %v2306_v12, %v2307_v14 }
 0x362   :  { %7213 = vmatprep.subr.bf16.mxu1 %v7753_v0 }
 0x363   :  { %v2309_v19 = vand.u32 4294901760, %v2308_v17 }
 0x364   :  { %6665 = vmatmul.mubr.f32.vlgmr.msra.gmra.mrb[8].mxu1 %v8237_v30 }
 0x365   :  { %7215 = vmatpush3.bf16.msra.mxu1 %v7205_v9  ;;  %6671 = vmatprep.mubr.msk.f32.mxu1 %vm7754_vm0, %v7755_v1 }
 0x366   :  { %7216 = vmatprep.subr.bf16.mxu1 %v7753_v0 }
 0x368   :  { %6672 = vmatmul.mubr.f32.vlgmr.msra.gmra.mrb[10].mxu1 %v8240_v31 }
 0x369   :  { %7218 = vmatpush3.bf16.msra.mxu1 %v7217_v18  ;;  %6678 = vmatprep.mubr.msk.f32.mxu1 %vm7754_vm0, %v7755_v1  ;;  %v1701_v34 = vpop.f32.mrb[2].mxu1 }
 0x36a   :  { %7219 = vmatprep.subr.bf16.mxu1 %v7753_v0  ;;  %v6645_v35 = vpop.f32.mrb[3].mxu1  ;;  %v7422_v59 = vadd.f32 %v6135_v55, %v1701_v34  ;;  %v2692_v34 = vand.u32 4294901760, %v2217_v27 }
 0x36b   :  { %v8305_v35 = vsub.f32 %v2214_v22, %v2683_v25 }
 0x36c   :  { %6679 = vmatmul.mubr.f32.vlgmr.msra.gmra.mrb[12].mxu1 %v8234_v29 }
 0x36d   :  { %7221 = vmatpush3.bf16.msra.mxu1 %v7205_v9  ;;  %6685 = vmatprep.mubr.msk.f32.mxu1 %vm7754_vm0, %v7755_v1  ;;  %v2221_v9 = vand.u32 4294901760, %v2218_v7 }
 0x36e   :  { %7222 = vmatprep.subr.bf16.mxu1 %v7753_v0 }
 0x36f   :  { %v2299_v11 = vsub.f32 %v2218_v7, %v2221_v9  ;;  %v7223_v15 = vpack.c.bf16 %v2224_v10, %v2221_v9 }
 0x370   :  { %6686 = vmatmul.mubr.f32.vlgmr.msra.gmra.mrb[14].mxu1 %v8234_v29 }
 0x371   :  { %6692 = vmatprep.mubr.msk.f32.mxu1 %vm7754_vm0, %v7755_v1  ;;  %v2300_v13 = vand.u32 4294901760, %v2299_v11  ;;  %7224 = vmatpush3.bf16.msra.mxu1 %v7223_v15  ;;  %v7229_v21 = vpack.c.bf16 %v2306_v12, %v2299_v11  ;;  %v3175_v12 = vld [vmem:[%s8679_s15] sm:$0xff] }
 0x372   :  { %7225 = vmatprep.subr.bf16.mxu1 %v7753_v0  ;;  %v3187_v17 = vand.u32 4294901760, %v3175_v12 }
 0x373   :  { %v2301_v16 = vsub.f32 %v2299_v11, %v2300_v13  ;;  %v7235_v32 = vpack.c.bf16 %v2307_v14, %v2300_v13  ;;  %v3176_v13 = vld [vmem:[%s8679_s15 + $0x8] sm:$0xff] }
 0x374   :  { %6693 = vmatmul.mubr.f32.vlgmr.msra.gmra.mrb[16].mxu1 %v8204_v61 }
 0x375   :  { %v2302_v18 = vand.u32 4294901760, %v2301_v16  ;;  %6699 = vmatprep.mubr.msk.f32.mxu1 %vm7754_vm0, %v7755_v1 }
 0x377   :  { %v7226_v20 = vpack.c.bf16 %v2309_v19, %v2302_v18  ;;  %v3190_v18 = vand.u32 4294901760, %v3176_v13 }
 0x379   :  { %7227 = vmatpush3.bf16.msra.mxu1 %v7226_v20  ;;  %v3265_v20 = vsub.f32 %v3175_v12, %v3187_v17 }
 0x37a   :  { %7228 = vmatprep.subr.bf16.mxu1 %v7753_v0 }
 0x37c   :  { %6700 = vmatmul.mubr.f32.vlgmr.msra.gmra.mrb[18].mxu1 %v8188_v48 }
 0x37d   :  { %7230 = vmatpush3.bf16.msra.mxu1 %v7229_v21  ;;  %6706 = vmatprep.mubr.msk.f32.mxu1 %vm7754_vm0, %v7755_v1  ;;  %v3272_v21 = vsub.f32 %v3176_v13, %v3190_v18 }
 0x37e   :  { %7231 = vmatprep.subr.bf16.mxu1 %v7753_v0 }
 0x380   :  { %6707 = vmatmul.mubr.f32.vlgmr.msra.gmra.mrb[20].mxu1 %v8194_v51 }
 0x381   :  { %7233 = vmatpush3.bf16.msra.mxu1 %v7223_v15  ;;  %6713 = vmatprep.mubr.msk.f32.mxu1 %vm7754_vm0, %v7755_v1 }
 0x382   :  { %7234 = vmatprep.subr.bf16.mxu1 %v7753_v0 }
 0x384   :  { %6714 = vmatmul.mubr.f32.vlgmr.msra.gmra.mrb[22].mxu1 %v8197_v54 }
 0x385   :  { %7236 = vmatpush3.bf16.msra.mxu1 %v7235_v32  ;;  %6720 = vmatprep.mubr.msk.f32.mxu1 %vm7754_vm0, %v7755_v1 }
 0x386   :  { %7237 = vmatprep.subr.bf16.mxu1 %v7753_v0 }
 0x388   :  { %6721 = vmatmul.mubr.f32.vlgmr.msra.gmra.mrb[24].mxu1 %v8188_v48 }
 0x389   :  { %7239 = vmatpush3.bf16.msra.mxu1 %v7223_v15  ;;  %6727 = vmatprep.mubr.msk.f32.mxu1 %vm7754_vm0, %v7755_v1 }
 0x38a   :  { %7246 = vmatprep.subr.bf16.mxu1 %v7753_v0 }
 0x38c   :  { %6728 = vmatmul.mubr.f32.vlgmr.msra.gmra.mrb[26].mxu1 %v8188_v48 }
 0x38d   :  { %6749 = vmatprep.mubr.msk.f32.mxu1 %vm7754_vm0, %v7755_v1 }
 0x42f   :  { %v1792_v37 = vpop.f32.mrb[4].mxu1 }
 0x430   :  { %v6652_v38 = vpop.f32.mrb[5].mxu1  ;;  %v1793_v39 = vadd.f32 %v6136_v36, %v1792_v37  ;;  %v8307_v36 = vsub.f32 %v2215_v23, %v2686_v26  ;;  %v8309_v37 = vsub.f32 %v2216_v24, %v2689_v28  ;;  %v3266_v24 = vand.u32 4294901760, %v3265_v20 }
 0x431   :  { %v8312_v38 = vsub.f32 %v2217_v27, %v2692_v34 }
 0x433   :  { %v1873_v40 = vpop.f32.mrb[6].mxu1 }
 0x434   :  { %v1874_v41 = vadd.f32 %v1873_v40, %v1793_v39  ;;  %v6659_v42 = vpop.f32.mrb[7].mxu1  ;;  %v8314_v39 = vpack.c.bf16 %v2686_v26, %v2683_v25  ;;  %v2764_v40 = vand.u32 4294901760, %v8305_v35  ;;  %v3273_v25 = vand.u32 4294901760, %v3272_v21 }
 0x435   :  { %v2778_v42 = vand.u32 4294901760, %v8309_v37 }
 0x436   :  { %7242 = vmatpush3.bf16.msra.mxu0 %v8314_v39  ;;  %v3274_v32 = vsub.f32 %v3272_v21, %v3273_v25 }
 0x437   :  { %v1949_v43 = vpop.f32.mrb[8].mxu1  ;;  %7243 = vmatprep.subr.bf16.mxu0 %v7753_v0 }
 0x438   :  { %v1950_v44 = vadd.f32 %v1949_v43, %v1874_v41  ;;  %v6666_v45 = vpop.f32.mrb[9].mxu1  ;;  %v2771_v41 = vand.u32 4294901760, %v8307_v36  ;;  %v2785_v43 = vand.u32 4294901760, %v8312_v38 }
 0x43a   :  { %v2772_v45 = vsub.f32 %v8307_v36, %v2771_v41 }
 0x43b   :  { %v2024_v46 = vpop.f32.mrb[10].mxu1 }
 0x43c   :  { %v2025_v47 = vadd.f32 %v2024_v46, %v1950_v44  ;;  %v6673_v49 = vpop.f32.mrb[11].mxu1  ;;  %v2765_v44 = vsub.f32 %v8305_v35, %v2764_v40  ;;  %v2779_v46 = vsub.f32 %v8309_v37, %v2778_v42 }
 0x43e   :  { %v2766_v49 = vand.u32 4294901760, %v2765_v44 }
 0x43f   :  { %v2101_v50 = vpop.f32.mrb[12].mxu1 }
 0x440   :  { %v2102_v52 = vadd.f32 %v2101_v50, %v2025_v47  ;;  %v6680_v53 = vpop.f32.mrb[13].mxu1  ;;  %v2786_v47 = vsub.f32 %v8312_v38, %v2785_v43  ;;  %v2773_v50 = vand.u32 4294901760, %v2772_v45 }
 0x441   :  { %v2780_v53 = vand.u32 4294901760, %v2779_v46 }
 0x442   :  { %v2787_v55 = vand.u32 4294901760, %v2786_v47 }
 0x443   :  { %v2174_v56 = vpop.f32.mrb[14].mxu1 }
 0x444   :  { %v2175_v57 = vadd.f32 %v2174_v56, %v2102_v52  ;;  %v6687_v58 = vpop.f32.mrb[15].mxu1  ;;  %v7247_v52 = vpack.c.bf16 %v2773_v50, %v2766_v49  ;;  %v7250_v56 = vpack.c.bf16 %v2787_v55, %v2780_v53 }
 0x445   :  { %v7253_v58 = vpack.c.bf16 %v8307_v36, %v8305_v35  ;;  %v3275_v36 = vand.u32 4294901760, %v3274_v32 }
 0x446   :  { %v2178_v60 = vadd.f32 1.0, %v2175_v57  ;;  %7248 = vmatpush3.bf16.msra.mxu1 %v7247_v52  ;;  %v7244_v57 = vpack.c.bf16 %v2692_v34, %v2689_v28  ;;  %v3267_v28 = vsub.f32 %v3265_v20, %v3266_v24 }
 0x447   :  { %7249 = vmatprep.subr.bf16.mxu1 %v7753_v0 }
 0x448   :  { %v2179_v62 = vmul.f32 %v7422_v59, %v2178_v60  ;;  %7245 = vmatpush3.bf16.msra.mxu0 %v7244_v57  ;;  %v7256_v59 = vpack.c.bf16 %v8312_v38, %v8309_v37  ;;  %v7265_v60 = vpack.c.bf16 %v2771_v41, %v2764_v40  ;;  %v3268_v35 = vand.u32 4294901760, %v3267_v28  ;;  %v2293_v41 = vpop.f32.mrb[16].mxu1 }
 0x449   :  { %7252 = vmatprep.subr.bf16.mxu0 %v7753_v0  ;;  %v7277_v38 = vpack.c.bf16 %v3190_v18, %v3187_v17  ;;  %v7289_v40 = vpack.c.bf16 %v3273_v25, %v3266_v24 }
 0x44a   :  { %v2181_v63 = vsel %vm2180_vm3, %v2179_v62, 0.0  ;;  %7251 = vmatpush3.bf16.msra.mxu1 %v7250_v56  ;;  %v7280_v37 = vpack.c.bf16 %v3275_v36, %v3268_v35 }
 0x44b   :  { %2182 = vadd.xlane.f32.xlu0 %v2181_v63  ;;  %7258 = vmatprep.subr.bf16.mxu1 %v7753_v0 }
 0x4d8   :  { %v2183_v2 = vpop.xlane.xlu0 %2182 }
 0x4d9   :  { %v2185_v3 = vmul.f32 0.03125, %v2183_v2 }
 0x4db   :  { %v8270_v4 = vsub.f32 %v2179_v62, %v2185_v3  ;;  %v8344_v62 = vpack.c.bf16 %v2785_v43, %v2778_v42  ;;  %v6694_v42 = vpop.f32.mrb[17].mxu1 }
 0x4dc   :  { %v2374_v43 = vpop.f32.mrb[18].mxu1 }
 0x4dd   :  { %v2187_v5 = vmul.f32 %v8270_v4, %v8270_v4  ;;  %v2375_v44 = vadd.f32 %v2374_v43, %v2293_v41  ;;  %v6701_v45 = vpop.f32.mrb[19].mxu1 }
 0x4de   :  { %v2450_v46 = vpop.f32.mrb[20].mxu1 }
 0x4df   :  { %v2188_v6 = vsel %vm2180_vm3, %v2187_v5, 0.0  ;;  %v2451_v47 = vadd.f32 %v2450_v46, %v2375_v44  ;;  %v6708_v49 = vpop.f32.mrb[21].mxu1 }
 0x4e0   :  { %2189 = vadd.xlane.f32.xlu0 %v2188_v6  ;;  %v6137_v6 = vld [vmem:[%s8674_s10] ss:$0 sm:$0xff]  ;;  %v2525_v50 = vpop.f32.mrb[22].mxu1 }
 0x4e1   :  { %v2526_v52 = vadd.f32 %v2525_v50, %v2451_v47  ;;  %v6715_v53 = vpop.f32.mrb[23].mxu1 }
 0x4e2   :  { %v2602_v55 = vpop.f32.mrb[24].mxu1  ;;  %v6147_v53 = vld [vmem:[%s8677_s13 + $0x10] sm:$0xff] }
 0x4e3   :  { %v2603_v56 = vadd.f32 %v2602_v55, %v2526_v52  ;;  %v6148_v55 = vld [vmem:[%s8677_s13 + $0x18] sm:$0xff] }
 0x56d   :  { %v2190_v63 = vpop.xlane.xlu0 %2189 }
 0x56e   :  { %v2191_v2 = vmul.f32 0.03125, %v2190_v63 }
 0x570   :  { %v2192_v3 = vadd.f32 1e-05, %v2191_v2 }
 0x572   :  { %7473 = vrsqrt.f32 %v2192_v3 }
 0x57c   :  { %v7474_v5 = vpop.eup %7473 }
 0x57d   :  { %v2194_v7 = vmul.f32 %v7474_v5, %v8270_v4 }
 0x57f   :  { %v2201_v9 = vmul.f32 %v6137_v6, %v2194_v7 }
 0x581   :  { %v2208_v10 = vadd.f32 %v6138_v8, %v2201_v9 }
 0x583   :  { %v2210_v11 = vmul.f32 0.70710677, %v2208_v10  ;;  %v2209_v15 = vmul.f32 0.5, %v2208_v10 }
 0x585   :  { %7475 = verf.f32 %v2210_v11 }
 0x58f   :  { %v7476_v14 = vpop.eup %7475 }
 0x590   :  { %v2212_v16 = vadd.f32 1.0, %v7476_v14 }
 0x592   :  { %v2213_v19 = vmul.f32 %v2212_v16, %v2209_v15 }
 0x594   :  { %v2680_v4 = vsel %vm2180_vm3, %v2213_v19, 0 }
 0x595   :  { %v2751_v22 = vand.u32 4294901760, %v2680_v4 }
 0x597   :  { %v2752_v23 = vsub.f32 %v2680_v4, %v2751_v22  ;;  %6750 = vmatmul.mubr.f32.vlgmr.msra.gmra.mrb[28].mxu1 %v2751_v22 }
 0x598   :  { %7260 = vmatpush3.bf16.msra.mxu1 %v8314_v39  ;;  %6771 = vmatprep.mubr.msk.f32.mxu1 %vm7754_vm0, %v7755_v1 }
 0x599   :  { %7261 = vmatprep.subr.bf16.mxu1 %v7753_v0  ;;  %v2753_v26 = vand.u32 4294901760, %v2752_v23 }
 0x59b   :  { %v2754_v27 = vsub.f32 %v2752_v23, %v2753_v26 }
 0x59c   :  { %7263 = vmatpush3.bf16.msra.mxu1 %v7244_v57 }
 0x59d   :  { %7270 = vmatprep.subr.bf16.mxu1 %v7753_v0  ;;  %v2755_v34 = vand.u32 4294901760, %v2754_v27 }
 0x59f   :  { %6772 = vmatmul.mubr.f32.vlgmr.msra.gmra.mrb[30].mxu1 %v2753_v26  ;;  %6739 = vmatmul.mubr.f32.vlgmr.msra.gmra.mrb[2].mxu0 %v2755_v34 }
 0x5a0   :  { %7254 = vmatpush3.bf16.msra.mxu0 %v7253_v58  ;;  %7272 = vmatpush3.bf16.msra.mxu1 %v8314_v39  ;;  %v7283_v39 = vpack.c.bf16 %v3272_v21, %v3265_v20  ;;  %v6140_v21 = vld [vmem:[%s8680_s16] ss:$0 sm:$0xff] }
 0x5a1   :  { %7255 = vmatprep.subr.bf16.mxu0 %v7753_v0  ;;  %7273 = vmatprep.subr.bf16.mxu1 %v7753_v0 }
 0x5a2   :  { %6760 = vmatprep.mubr.msk.f32.mxu0 %vm7754_vm0, %v7755_v1  ;;  %6793 = vmatprep.mubr.msk.f32.mxu1 %vm7754_vm0, %v7755_v1 }
 0x5a4   :  { %7257 = vmatpush3.bf16.msra.mxu0 %v7256_v59  ;;  %7275 = vmatpush3.bf16.msra.mxu1 %v7244_v57  ;;  %v6722_v57 = vpop.f32.mrb[25].mxu1 }
 0x5a5   :  { %7264 = vmatprep.subr.bf16.mxu0 %v7753_v0  ;;  %7279 = vmatprep.subr.bf16.mxu1 %v7753_v0  ;;  %v2675_v58 = vpop.f32.mrb[26].mxu1  ;;  %v3691_v57 = vand.u32 4294901760, %v6148_v55 }
 0x5a6   :  { %v2676_v59 = vadd.f32 %v2675_v58, %v2603_v56  ;;  %v3688_v56 = vand.u32 4294901760, %v6147_v53 }
 0x5a7   :  { %6761 = vmatmul.mubr.f32.vlgmr.msra.gmra.mrb[4].mxu0 %v2752_v23  ;;  %6794 = vmatmul.mubr.f32.vlgmr.msra.gmra.mrb[32].mxu1 %v2751_v22 }
 0x5a8   :  { %7266 = vmatpush3.bf16.msra.mxu0 %v7265_v60  ;;  %7281 = vmatpush3.bf16.msra.mxu1 %v7280_v37  ;;  %v6729_v60 = vpop.f32.mrb[27].mxu1  ;;  %v3766_v58 = vsub.f32 %v6147_v53, %v3688_v56 }
 0x5a9   :  { %6807 = vmatprep.mubr.msk.f32.mxu1 %vm7754_vm0, %v7755_v1  ;;  %7267 = vmatprep.subr.bf16.mxu0 %v7753_v0 }
 0x5aa   :  { %7285 = vmatprep.subr.bf16.mxu1 %v7753_v0  ;;  %6782 = vmatprep.mubr.msk.f32.mxu0 %vm7754_vm0, %v7755_v1  ;;  %v3767_v60 = vand.u32 4294901760, %v3766_v58 }
 0x5ab   :  { %6808 = vmatmul.mubr.f32.vlgmr.msra.gmra.mrb[34].mxu1 %v8234_v29 }
 0x5ac   :  { %7269 = vmatpush3.bf16.msra.mxu0 %v8344_v62  ;;  %7287 = vmatpush3.bf16.msra.mxu1 %v7277_v38 }
 0x5ad   :  { %6821 = vmatprep.mubr.msk.f32.mxu1 %vm7754_vm0, %v7755_v1  ;;  %7276 = vmatprep.subr.bf16.mxu0 %v7753_v0 }
 0x5ae   :  { %7291 = vmatprep.subr.bf16.mxu1 %v7753_v0 }
 0x5af   :  { %6783 = vmatmul.mubr.f32.vlgmr.msra.gmra.mrb[6].mxu0 %v2751_v22  ;;  %6822 = vmatmul.mubr.f32.vlgmr.msra.gmra.mrb[36].mxu1 %v8240_v31 }
 0x5b0   :  { %7278 = vmatpush3.bf16.msra.mxu0 %v7277_v38  ;;  %7293 = vmatpush3.bf16.msra.mxu1 %v7277_v38 }
 0x5b1   :  { %6800 = vmatprep.mubr.msk.f32.mxu0 %vm7754_vm0, %v7755_v1  ;;  %6835 = vmatprep.mubr.msk.f32.mxu1 %vm7754_vm0, %v7755_v1 }
 0x5b2   :  { %7282 = vmatprep.subr.bf16.mxu0 %v7753_v0  ;;  %7297 = vmatprep.subr.bf16.mxu1 %v7753_v0 }
 0x5b3   :  { %6801 = vmatmul.mubr.f32.vlgmr.msra.gmra.mrb[8].mxu0 %v8244_v33  ;;  %6836 = vmatmul.mubr.f32.vlgmr.msra.gmra.mrb[38].mxu1 %v8234_v29 }
 0x5b4   :  { %7284 = vmatpush3.bf16.msra.mxu0 %v7283_v39  ;;  %6814 = vmatprep.mubr.msk.f32.mxu0 %vm7754_vm0, %v7755_v1 }
 0x5b5   :  { %7288 = vmatprep.subr.bf16.mxu0 %v7753_v0  ;;  %6849 = vmatprep.mubr.msk.f32.mxu1 %vm7754_vm0, %v7755_v1 }
 0x5b7   :  { %6815 = vmatmul.mubr.f32.vlgmr.msra.gmra.mrb[10].mxu0 %v8237_v30 }
 0x5b8   :  { %7290 = vmatpush3.bf16.msra.mxu0 %v7289_v40  ;;  %6828 = vmatprep.mubr.msk.f32.mxu0 %vm7754_vm0, %v7755_v1  ;;  %v6139_v40 = vld [vmem:[%s8678_s14] ss:$0 sm:$0xff] }
 0x5b9   :  { %7294 = vmatprep.subr.bf16.mxu0 %v7753_v0 }
 0x5bb   :  { %6829 = vmatmul.mubr.f32.vlgmr.msra.gmra.mrb[12].mxu0 %v8234_v29 }
 0x5bc   :  { %6842 = vmatprep.mubr.msk.f32.mxu0 %vm7754_vm0, %v7755_v1 }
 0x66a   :  { %v2848_v62 = vpop.f32.mrb[28].mxu1 }
 0x66b   :  { %v6751_v63 = vpop.f32.mrb[29].mxu1 }
 0x66c   :  { %v3768_v63 = vsub.f32 %v3766_v58, %v3767_v60 }
 0x672   :  { %v3005_v2 = vpop.f32.mrb[30].mxu1  ;;  %v2757_v3 = vpop.f32.mrb[2].mxu0 }
 0x673   :  { %v2758_v5 = vadd.f32 %v2757_v3, %v2676_v59  ;;  %v6773_v6 = vpop.f32.mrb[31].mxu1  ;;  %v6740_v7 = vpop.f32.mrb[3].mxu0  ;;  %v3773_v59 = vsub.f32 %v6148_v55, %v3691_v57  ;;  %v3769_v3 = vand.u32 4294901760, %v3768_v63  ;;  %v6142_v55 = vld [vmem:[%s8682_s18] ss:$0 sm:$0xff] }
 0x674   :  { %v7295_v6 = vpack.c.bf16 %v3691_v57, %v3688_v56  ;;  %v6143_v7 = vld [vmem:[%s8676_s12 + $0x20] sm:$0xff] }
 0x675   :  { %v2849_v8 = vadd.f32 %v2848_v62, %v2758_v5  ;;  %v3774_v62 = vand.u32 4294901760, %v3773_v59 }
 0x676   :  { %7296 = vmatpush3.bf16.msra.mxu0 %v7295_v6 }
 0x677   :  { %7300 = vmatprep.subr.bf16.mxu0 %v7753_v0 }
 0x679   :  { %6843 = vmatmul.mubr.f32.vlgmr.msra.gmra.mrb[14].mxu0 %v8204_v61 }
 0x67a   :  { %v2928_v9 = vpop.f32.mrb[4].mxu0  ;;  %v3163_v10 = vpop.f32.mrb[32].mxu1  ;;  %6856 = vmatprep.mubr.msk.f32.mxu0 %vm7754_vm0, %v7755_v1 }
 0x67b   :  { %v2929_v11 = vadd.f32 %v2928_v9, %v2849_v8  ;;  %v6762_v12 = vpop.f32.mrb[5].mxu0  ;;  %v6795_v13 = vpop.f32.mrb[33].mxu1  ;;  %v6144_v8 = vld [vmem:[%s8676_s12 + $0x28] sm:$0xff]  ;;  %v6145_v9 = vld [vmem:[%s8676_s12 + $0x30] sm:$0xff] }
 0x67c   :  { %v6146_v12 = vld [vmem:[%s8676_s12 + $0x38] sm:$0xff]  ;;  %v4156_v13 = vand.u32 4294901760, %v6145_v9  ;;  %s8714_s12 = sld [smem:[#allocation35_spill]] }
 0x67d   :  { %v3006_v14 = vadd.f32 %v3005_v2, %v2929_v11  ;;  %v3775_v2 = vsub.f32 %v3773_v59, %v3774_v62  ;;  %v4153_v11 = vand.u32 4294901760, %v6144_v8 }
 0x67e   :  { %v3340_v15 = vpop.f32.mrb[34].mxu1 }
 0x67f   :  { %v6809_v16 = vpop.f32.mrb[35].mxu1  ;;  %v3776_v5 = vand.u32 4294901760, %v3775_v2 }
 0x680   :  { %v4159_v16 = vand.u32 4294901760, %v6146_v12 }
 0x682   :  { %v3088_v17 = vpop.f32.mrb[6].mxu0  ;;  %v3491_v18 = vpop.f32.mrb[36].mxu1 }
 0x683   :  { %v3089_v19 = vadd.f32 %v3088_v17, %v3006_v14  ;;  %v6784_v4 = vpop.f32.mrb[7].mxu0  ;;  %v6823_v20 = vpop.f32.mrb[37].mxu1  ;;  %v7298_v14 = vpack.c.bf16 %v3776_v5, %v3769_v3 }
 0x684   :  { %v8441_v4 = vsub.f32 %v6146_v12, %v4159_v16 }
 0x685   :  { %v3164_v22 = vadd.f32 %v3163_v10, %v3089_v19  ;;  %v4150_v10 = vand.u32 4294901760, %v6143_v7  ;;  %v8439_v19 = vsub.f32 %v6145_v9, %v4156_v13  ;;  %7299 = vmatpush3.bf16.msra.mxu1 %v7298_v14 }
 0x686   :  { %v3259_v23 = vpop.f32.mrb[8].mxu0  ;;  %v3641_v24 = vpop.f32.mrb[38].mxu1  ;;  %7303 = vmatprep.subr.bf16.mxu1 %v7753_v0 }
 0x687   :  { %v3260_v25 = vadd.f32 %v6140_v21, %v3259_v23  ;;  %v6802_v26 = vpop.f32.mrb[9].mxu0  ;;  %v6837_v27 = vpop.f32.mrb[39].mxu1  ;;  %v3174_v43 = vadd.f32 %v6139_v40, %v3164_v22  ;;  %v8435_v17 = vsub.f32 %v6143_v7, %v4150_v10  ;;  %v4245_v22 = vand.u32 4294901760, %v8439_v19 }
 0x688   :  { %v7307_v23 = vpack.c.bf16 %v3774_v62, %v3767_v60  ;;  %6850 = vmatmul.mubr.f32.vlgmr.msra.gmra.mrb[40].mxu1 %v8188_v48  ;;  %v7316_v40 = vpack.c.bf16 %v4159_v16, %v4156_v13  ;;  %v6152_v60 = vld [vmem:[%s8679_s15 + $0x18] sm:$0xff] }
 0x689   :  { %v3341_v28 = vadd.f32 %v3340_v15, %v3260_v25  ;;  %v7301_v15 = vpack.c.bf16 %v3773_v59, %v3766_v58  ;;  %v4231_v20 = vand.u32 4294901760, %v8435_v17  ;;  %7305 = vmatpush3.bf16.msra.mxu1 %v7295_v6  ;;  %6863 = vmatprep.mubr.msk.f32.mxu1 %vm7754_vm0, %v7755_v1  ;;  %v4246_v27 = vsub.f32 %v8439_v19, %v4245_v22  ;;  %v6151_v59 = vld [vmem:[%s8679_s15 + $0x10] sm:$0xff] }
 0x68a   :  { %v3416_v32 = vpop.f32.mrb[10].mxu0  ;;  %7309 = vmatprep.subr.bf16.mxu1 %v7753_v0  ;;  %v4662_v3 = vand.u32 4294901760, %v6152_v60 }
 0x68b   :  { %v3417_v34 = vadd.f32 %v3416_v32, %v3341_v28  ;;  %v6816_v35 = vpop.f32.mrb[11].mxu0  ;;  %7302 = vmatpush3.bf16.msra.mxu0 %v7301_v15  ;;  %v4232_v25 = vsub.f32 %v8435_v17, %v4231_v20 }
 0x68c   :  { %7306 = vmatprep.subr.bf16.mxu0 %v7753_v0  ;;  %v8463_v35 = vpack.c.bf16 %v4153_v11, %v4150_v10  ;;  %6864 = vmatmul.mubr.f32.vlgmr.msra.gmra.mrb[42].mxu1 %v8197_v54 }
 0x68d   :  { %v3492_v36 = vadd.f32 %v3491_v18, %v3417_v34  ;;  %v8437_v18 = vsub.f32 %v6144_v8, %v4153_v11  ;;  %v4233_v32 = vand.u32 4294901760, %v4232_v25  ;;  %7311 = vmatpush3.bf16.msra.mxu1 %v7295_v6  ;;  %6877 = vmatprep.mubr.msk.f32.mxu1 %vm7754_vm0, %v7755_v1  ;;  %v4744_v8 = vsub.f32 %v6152_v60, %v4662_v3 }
 0x68e   :  { %v3568_v37 = vpop.f32.mrb[12].mxu0  ;;  %6857 = vmatmul.mubr.f32.vlgmr.msra.gmra.mrb[16].mxu0 %v8194_v51  ;;  %7318 = vmatprep.subr.bf16.mxu1 %v7753_v0 }
 0x68f   :  { %v3569_v38 = vadd.f32 %v3568_v37, %v3492_v36  ;;  %v6830_v39 = vpop.f32.mrb[13].mxu0  ;;  %v4238_v21 = vand.u32 4294901760, %v8437_v18  ;;  %7308 = vmatpush3.bf16.msra.mxu0 %v7307_v23  ;;  %6870 = vmatprep.mubr.msk.f32.mxu0 %vm7754_vm0, %v7755_v1  ;;  %v4247_v37 = vand.u32 4294901760, %v4246_v27  ;;  %v4745_v12 = vand.u32 4294901760, %v4744_v8 }
 0x690   :  { %7312 = vmatprep.subr.bf16.mxu0 %v7753_v0  ;;  %6878 = vmatmul.mubr.f32.vlgmr.msra.gmra.mrb[44].mxu1 %v8188_v48 }
 0x691   :  { %v3642_v41 = vadd.f32 %v3641_v24, %v3569_v38  ;;  %v4252_v24 = vand.u32 4294901760, %v8441_v4  ;;  %v4239_v26 = vsub.f32 %v8437_v18, %v4238_v21  ;;  %6899 = vmatprep.mubr.msk.f32.mxu1 %vm7754_vm0, %v7755_v1  ;;  %v4746_v16 = vsub.f32 %v4744_v8, %v4745_v12 }
 0x692   :  { %6871 = vmatmul.mubr.f32.vlgmr.msra.gmra.mrb[18].mxu0 %v8188_v48 }
 0x693   :  { %v3645_v42 = vadd.f32 1.0, %v3642_v41  ;;  %v4253_v28 = vsub.f32 %v8441_v4, %v4252_v24  ;;  %v4240_v34 = vand.u32 4294901760, %v4239_v26  ;;  %7314 = vmatpush3.bf16.msra.mxu0 %v8463_v35  ;;  %6888 = vmatprep.mubr.msk.f32.mxu0 %vm7754_vm0, %v7755_v1  ;;  %v7325_v41 = vpack.c.bf16 %v8437_v18, %v8435_v17 }
 0x694   :  { %7315 = vmatprep.subr.bf16.mxu0 %v7753_v0 }
 0x695   :  { %v3646_v44 = vmul.f32 %v3645_v42, %v3174_v43  ;;  %v7319_v36 = vpack.c.bf16 %v4240_v34, %v4233_v32  ;;  %v4254_v38 = vand.u32 4294901760, %v4253_v28  ;;  %v7328_v42 = vpack.c.bf16 %v8441_v4, %v8439_v19 }
 0x696   :  { %v7337_v43 = vpack.c.bf16 %v4238_v21, %v4231_v20  ;;  %v4747_v19 = vand.u32 4294901760, %v4746_v16 }
 0x697   :  { %v3647_v45 = vsel %vm2180_vm3, %v3646_v44, 0.0  ;;  %7320 = vmatpush3.bf16.msra.mxu1 %v7319_v36  ;;  %v7322_v39 = vpack.c.bf16 %v4254_v38, %v4247_v37  ;;  %7317 = vmatpush3.bf16.msra.mxu0 %v7316_v40 }
 0x698   :  { %3648 = vadd.xlane.f32.xlu1 %v3647_v45  ;;  %7321 = vmatprep.subr.bf16.mxu1 %v7753_v0 }
 0x699   :  { %7324 = vmatprep.subr.bf16.mxu0 %v7753_v0 }
 0x69b   :  { %7323 = vmatpush3.bf16.msra.mxu1 %v7322_v39 }
 0x69c   :  { %7330 = vmatprep.subr.bf16.mxu1 %v7753_v0 }
 0x725   :  { %v3649_v46 = vpop.xlane.xlu1 %3648 }
 0x726   :  { %v3650_v47 = vmul.f32 0.03125, %v3649_v46 }
 0x728   :  { %v8411_v49 = vsub.f32 %v3646_v44, %v3650_v47  ;;  %v8485_v44 = vpack.c.bf16 %v4252_v24, %v4245_v22 }
 0x72a   :  { %v3652_v50 = vmul.f32 %v8411_v49, %v8411_v49 }
 0x72c   :  { %v3653_v52 = vsel %vm2180_vm3, %v3652_v50, 0.0 }
 0x72d   :  { %3654 = vadd.xlane.f32.xlu1 %v3653_v52  ;;  %v6141_v52 = vld [vmem:[%s8681_s17] ss:$0 sm:$0xff] }
 0x75b   :  { %v3841_v23 = vpop.f32.mrb[40].mxu1 }
 0x75c   :  { %v6851_v25 = vpop.f32.mrb[41].mxu1 }
 0x7ba   :  { %v3655_v45 = vpop.xlane.xlu1 %3654 }
 0x7bb   :  { %v3656_v46 = vmul.f32 0.03125, %v3655_v45 }
 0x7bd   :  { %v3657_v47 = vadd.f32 1e-05, %v3656_v46 }
 0x7bf   :  { %7477 = vrsqrt.f32 %v3657_v47 }
 0x7c9   :  { %v7478_v50 = vpop.eup %7477 }
 0x7ca   :  { %v3659_v53 = vmul.f32 %v7478_v50, %v8411_v49  ;;  %v4659_v49 = vand.u32 4294901760, %v6151_v59 }
 0x7cc   :  { %v3666_v56 = vmul.f32 %v6141_v52, %v3659_v53  ;;  %v4737_v7 = vsub.f32 %v6151_v59, %v4659_v49  ;;  %v7349_v20 = vpack.c.bf16 %v4662_v3, %v4659_v49  ;;  %v6156_v3 = vld [vmem:[%s8680_s16 + $0x1] ss:$0 sm:$0xff] }
 0x7ce   :  { %v3673_v57 = vadd.f32 %v6142_v55, %v3666_v56  ;;  %v4738_v11 = vand.u32 4294901760, %v4737_v7  ;;  %v7355_v21 = vpack.c.bf16 %v4744_v8, %v4737_v7 }
 0x7d0   :  { %v3675_v58 = vmul.f32 0.70710677, %v3673_v57  ;;  %v3674_v63 = vmul.f32 0.5, %v3673_v57  ;;  %v4739_v15 = vsub.f32 %v4737_v7, %v4738_v11 }
 0x7d2   :  { %7479 = verf.f32 %v3675_v58  ;;  %v4740_v18 = vand.u32 4294901760, %v4739_v15 }
 0x7d4   :  { %v7352_v4 = vpack.c.bf16 %v4747_v19, %v4740_v18  ;;  %v6150_v19 = vld [vmem:[%s8678_s14 + $0x1] ss:$0 sm:$0xff] }
 0x7dc   :  { %v7480_v62 = vpop.eup %7479 }
 0x7dd   :  { %v3677_v2 = vadd.f32 1.0, %v7480_v62 }
 0x7df   :  { %v3678_v5 = vmul.f32 %v3677_v2, %v3674_v63 }
 0x7e1   :  { %v4147_v6 = vsel %vm2180_vm3, %v3678_v5, 0 }
 0x7e2   :  { %v4218_v9 = vand.u32 4294901760, %v4147_v6 }
 0x7e4   :  { %v4219_v10 = vsub.f32 %v4147_v6, %v4218_v9  ;;  %6900 = vmatmul.mubr.f32.vlgmr.msra.gmra.mrb[46].mxu1 %v4218_v9 }
 0x7e5   :  { %7332 = vmatpush3.bf16.msra.mxu1 %v8463_v35  ;;  %6921 = vmatprep.mubr.msk.f32.mxu1 %vm7754_vm0, %v7755_v1 }
 0x7e6   :  { %7333 = vmatprep.subr.bf16.mxu1 %v7753_v0  ;;  %v4220_v13 = vand.u32 4294901760, %v4219_v10 }
 0x7e8   :  { %v4221_v14 = vsub.f32 %v4219_v10, %v4220_v13 }
 0x7e9   :  { %7335 = vmatpush3.bf16.msra.mxu1 %v7316_v40 }
 0x7ea   :  { %7342 = vmatprep.subr.bf16.mxu1 %v7753_v0  ;;  %v4222_v17 = vand.u32 4294901760, %v4221_v14 }
 0x7ec   :  { %6922 = vmatmul.mubr.f32.vlgmr.msra.gmra.mrb[48].mxu1 %v4220_v13  ;;  %6889 = vmatmul.mubr.f32.vlgmr.msra.gmra.mrb[20].mxu0 %v4222_v17 }
 0x7ed   :  { %7326 = vmatpush3.bf16.msra.mxu0 %v7325_v41  ;;  %7344 = vmatpush3.bf16.msra.mxu1 %v8463_v35 }
 0x7ee   :  { %7327 = vmatprep.subr.bf16.mxu0 %v7753_v0  ;;  %7345 = vmatprep.subr.bf16.mxu1 %v7753_v0 }
 0x7ef   :  { %6910 = vmatprep.mubr.msk.f32.mxu0 %vm7754_vm0, %v7755_v1  ;;  %6943 = vmatprep.mubr.msk.f32.mxu1 %vm7754_vm0, %v7755_v1 }
 0x7f1   :  { %7329 = vmatpush3.bf16.msra.mxu0 %v7328_v42  ;;  %7347 = vmatpush3.bf16.msra.mxu1 %v7316_v40 }
 0x7f2   :  { %7336 = vmatprep.subr.bf16.mxu0 %v7753_v0  ;;  %7351 = vmatprep.subr.bf16.mxu1 %v7753_v0 }
 0x7f4   :  { %6911 = vmatmul.mubr.f32.vlgmr.msra.gmra.mrb[22].mxu0 %v4219_v10  ;;  %6944 = vmatmul.mubr.f32.vlgmr.msra.gmra.mrb[50].mxu1 %v4218_v9 }
 0x7f5   :  { %7338 = vmatpush3.bf16.msra.mxu0 %v7337_v43  ;;  %7353 = vmatpush3.bf16.msra.mxu1 %v7352_v4 }
 0x7f6   :  { %6957 = vmatprep.mubr.msk.f32.mxu1 %vm7754_vm0, %v7755_v1  ;;  %7339 = vmatprep.subr.bf16.mxu0 %v7753_v0 }
 0x7f7   :  { %7357 = vmatprep.subr.bf16.mxu1 %v7753_v0  ;;  %6932 = vmatprep.mubr.msk.f32.mxu0 %vm7754_vm0, %v7755_v1 }
 0x7f8   :  { %6958 = vmatmul.mubr.f32.vlgmr.msra.gmra.mrb[52].mxu1 %v8234_v29 }
 0x7f9   :  { %7341 = vmatpush3.bf16.msra.mxu0 %v8485_v44  ;;  %7359 = vmatpush3.bf16.msra.mxu1 %v7349_v20 }
 0x7fa   :  { %6971 = vmatprep.mubr.msk.f32.mxu1 %vm7754_vm0, %v7755_v1  ;;  %7348 = vmatprep.subr.bf16.mxu0 %v7753_v0 }
 0x7fb   :  { %7363 = vmatprep.subr.bf16.mxu1 %v7753_v0 }
 0x7fc   :  { %6933 = vmatmul.mubr.f32.vlgmr.msra.gmra.mrb[24].mxu0 %v4218_v9  ;;  %6972 = vmatmul.mubr.f32.vlgmr.msra.gmra.mrb[54].mxu1 %v8240_v31  ;;  %v7361_v31 = vpack.c.bf16 %v4745_v12, %v4738_v11 }
 0x7fd   :  { %7350 = vmatpush3.bf16.msra.mxu0 %v7349_v20  ;;  %7365 = vmatpush3.bf16.msra.mxu1 %v7349_v20 }
 0x7fe   :  { %6950 = vmatprep.mubr.msk.f32.mxu0 %vm7754_vm0, %v7755_v1  ;;  %6985 = vmatprep.mubr.msk.f32.mxu1 %vm7754_vm0, %v7755_v1 }
 0x7ff   :  { %7354 = vmatprep.subr.bf16.mxu0 %v7753_v0  ;;  %7369 = vmatprep.subr.bf16.mxu1 %v7753_v0 }
 0x800   :  { %6951 = vmatmul.mubr.f32.vlgmr.msra.gmra.mrb[26].mxu0 %v8244_v33  ;;  %6986 = vmatmul.mubr.f32.vlgmr.msra.gmra.mrb[56].mxu1 %v8234_v29  ;;  %v3760_v33 = vpop.f32.mrb[14].mxu0 }
 0x801   :  { %7356 = vmatpush3.bf16.msra.mxu0 %v7355_v21  ;;  %6964 = vmatprep.mubr.msk.f32.mxu0 %vm7754_vm0, %v7755_v1  ;;  %v6844_v22 = vpop.f32.mrb[15].mxu0  ;;  %v3842_v24 = vadd.f32 %v3841_v23, %v3760_v33 }
 0x802   :  { %7360 = vmatprep.subr.bf16.mxu0 %v7753_v0  ;;  %6999 = vmatprep.mubr.msk.f32.mxu1 %vm7754_vm0, %v7755_v1  ;;  %v3917_v26 = vpop.f32.mrb[16].mxu0 }
 0x803   :  { %v3918_v27 = vadd.f32 %v3917_v26, %v3842_v24  ;;  %v6858_v28 = vpop.f32.mrb[17].mxu0 }
 0x804   :  { %6965 = vmatmul.mubr.f32.vlgmr.msra.gmra.mrb[28].mxu0 %v8237_v30  ;;  %v3992_v30 = vpop.f32.mrb[42].mxu1  ;;  %v4069_v35 = vpop.f32.mrb[18].mxu0  ;;  %v5156_v28 = vld [vmem:[%s8684_s20 + $0x8] sm:$0xff] }
 0x805   :  { %7362 = vmatpush3.bf16.msra.mxu0 %v7361_v31  ;;  %6978 = vmatprep.mubr.msk.f32.mxu0 %vm7754_vm0, %v7755_v1  ;;  %v3993_v32 = vadd.f32 %v3992_v30, %v3918_v27  ;;  %v6865_v34 = vpop.f32.mrb[43].mxu1  ;;  %v6872_v37 = vpop.f32.mrb[19].mxu0  ;;  %v5155_v27 = vld [vmem:[%s8684_s20] sm:$0xff] }
 0x806   :  { %7366 = vmatprep.subr.bf16.mxu0 %v7753_v0  ;;  %v4142_v38 = vpop.f32.mrb[44].mxu1  ;;  %v5158_v30 = vand.u32 4294901760, %v5155_v27 }
 0x807   :  { %v4070_v36 = vadd.f32 %v4069_v35, %v3993_v32  ;;  %v5161_v32 = vand.u32 4294901760, %v5156_v28 }
 0x808   :  { %6979 = vmatmul.mubr.f32.vlgmr.msra.gmra.mrb[30].mxu0 %v8234_v29  ;;  %v6879_v29 = vpop.f32.mrb[45].mxu1  ;;  %v5236_v34 = vsub.f32 %v5155_v27, %v5158_v30 }
 0x809   :  { %6992 = vmatprep.mubr.msk.f32.mxu0 %vm7754_vm0, %v7755_v1  ;;  %v4143_v39 = vadd.f32 %v4142_v38, %v4070_v36  ;;  %v5243_v35 = vsub.f32 %v5156_v28, %v5161_v32 }
 0x80a   :  { %v5237_v36 = vand.u32 4294901760, %v5236_v34 }
 0x80b   :  { %v5244_v37 = vand.u32 4294901760, %v5243_v35 }
 0x80c   :  { %v5238_v38 = vsub.f32 %v5236_v34, %v5237_v36 }
 0x80e   :  { %v5239_v29 = vand.u32 4294901760, %v5238_v38 }
 0x8b7   :  { %v4315_v40 = vpop.f32.mrb[46].mxu1 }
 0x8b8   :  { %v6901_v41 = vpop.f32.mrb[47].mxu1 }
 0x8b9   :  { %v7367_v41 = vpack.c.bf16 %v5161_v32, %v5158_v30 }
 0x8bb   :  { %7368 = vmatpush3.bf16.msra.mxu0 %v7367_v41 }
 0x8bc   :  { %7372 = vmatprep.subr.bf16.mxu0 %v7753_v0 }
 0x8be   :  { %6993 = vmatmul.mubr.f32.vlgmr.msra.gmra.mrb[32].mxu0 %v8204_v61 }
 0x8bf   :  { %v4472_v42 = vpop.f32.mrb[48].mxu1  ;;  %v4224_v43 = vpop.f32.mrb[20].mxu0  ;;  %7006 = vmatprep.mubr.msk.f32.mxu0 %vm7754_vm0, %v7755_v1 }
 0x8c0   :  { %v4225_v44 = vadd.f32 %v4224_v43, %v4143_v39  ;;  %v6923_v45 = vpop.f32.mrb[49].mxu1  ;;  %v6890_v46 = vpop.f32.mrb[21].mxu0  ;;  %v5245_v39 = vsub.f32 %v5243_v35, %v5244_v37  ;;  %v5152_v43 = vld [vmem:[%s8713_s3 + $0x8] sm:$0xff] }
 0x8c1   :  { %v5623_v46 = vand.u32 4294901760, %v5152_v43 }
 0x8c2   :  { %v4316_v47 = vadd.f32 %v4315_v40, %v4225_v44  ;;  %v5246_v40 = vand.u32 4294901760, %v5245_v39  ;;  %v5153_v44 = vld [vmem:[%s8713_s3 + $0x10] sm:$0xff] }
 0x8c7   :  { %v4395_v50 = vpop.f32.mrb[22].mxu0  ;;  %v4630_v52 = vpop.f32.mrb[50].mxu1 }
 0x8c8   :  { %v4396_v53 = vadd.f32 %v4395_v50, %v4316_v47  ;;  %v6912_v55 = vpop.f32.mrb[23].mxu0  ;;  %v6945_v56 = vpop.f32.mrb[51].mxu1  ;;  %v5154_v47 = vld [vmem:[%s8713_s3 + $0x18] sm:$0xff]  ;;  %v5626_v50 = vand.u32 4294901760, %v5153_v44 }
 0x8c9   :  { %v5629_v55 = vand.u32 4294901760, %v5154_v47 }
 0x8ca   :  { %v4473_v57 = vadd.f32 %v4472_v42, %v4396_v53  ;;  %v5151_v42 = vld [vmem:[%s8713_s3] sm:$0xff]  ;;  %v7373_v53 = vpack.c.bf16 %v5243_v35, %v5236_v34 }
 0x8cb   :  { %v4812_v58 = vpop.f32.mrb[52].mxu1  ;;  %v5620_v45 = vand.u32 4294901760, %v5151_v42 }
 0x8cc   :  { %v6959_v59 = vpop.f32.mrb[53].mxu1  ;;  %7374 = vmatpush3.bf16.msra.mxu0 %v7373_v53 }
 0x8cd   :  { %v8579_v56 = vsub.f32 %v5151_v42, %v5620_v45  ;;  %v8585_v59 = vsub.f32 %v5154_v47, %v5629_v55  ;;  %7378 = vmatprep.subr.bf16.mxu0 %v7753_v0 }
 0x8cf   :  { %v4555_v60 = vpop.f32.mrb[24].mxu0  ;;  %v4963_v62 = vpop.f32.mrb[54].mxu1  ;;  %7007 = vmatmul.mubr.f32.vlgmr.msra.gmra.mrb[34].mxu0 %v8194_v51 }
 0x8d0   :  { %v4556_v63 = vadd.f32 %v4555_v60, %v4473_v57  ;;  %v6934_v2 = vpop.f32.mrb[25].mxu0  ;;  %v6973_v49 = vpop.f32.mrb[55].mxu1  ;;  %v8581_v57 = vsub.f32 %v5152_v43, %v5623_v46  ;;  %v5701_v60 = vand.u32 4294901760, %v8579_v56  ;;  %7020 = vmatprep.mubr.msk.f32.mxu0 %vm7754_vm0, %v7755_v1 }
 0x8d1   :  { %v7379_v2 = vpack.c.bf16 %v5244_v37, %v5237_v36  ;;  %v5722_v49 = vand.u32 4294901760, %v8585_v59 }
 0x8d2   :  { %v4631_v5 = vadd.f32 %v4630_v52, %v4556_v63  ;;  %v7370_v52 = vpack.c.bf16 %v5246_v40, %v5239_v29 }
 0x8d3   :  { %v4731_v6 = vpop.f32.mrb[26].mxu0  ;;  %v5113_v7 = vpop.f32.mrb[56].mxu1  ;;  %7380 = vmatpush3.bf16.msra.mxu0 %v7379_v2 }
 0x8d4   :  { %v4732_v8 = vadd.f32 %v6156_v3, %v4731_v6  ;;  %v6952_v9 = vpop.f32.mrb[27].mxu0  ;;  %v6987_v10 = vpop.f32.mrb[57].mxu1  ;;  %v4642_v21 = vadd.f32 %v6150_v19, %v4631_v5  ;;  %7371 = vmatpush3.bf16.msra.mxu1 %v7370_v52  ;;  %v5702_v3 = vsub.f32 %v8579_v56, %v5701_v60  ;;  %v5723_v6 = vsub.f32 %v8585_v59, %v5722_v49 }
 0x8d5   :  { %7375 = vmatprep.subr.bf16.mxu1 %v7753_v0  ;;  %v7385_v9 = vpack.c.bf16 %v5623_v46, %v5620_v45  ;;  %7384 = vmatprep.subr.bf16.mxu0 %v7753_v0 }
 0x8d6   :  { %v4813_v11 = vadd.f32 %v4812_v58, %v4732_v8  ;;  %v8583_v58 = vsub.f32 %v5153_v44, %v5626_v50  ;;  %7021 = vmatmul.mubr.f32.vlgmr.msra.gmra.mrb[36].mxu0 %v8188_v48 }
 0x8d7   :  { %v4888_v12 = vpop.f32.mrb[28].mxu0  ;;  %7000 = vmatmul.mubr.f32.vlgmr.msra.gmra.mrb[58].mxu1 %v8188_v48  ;;  %7386 = vmatpush3.bf16.msra.mxu0 %v7385_v9 }
 0x8d8   :  { %v4889_v13 = vadd.f32 %v4888_v12, %v4813_v11  ;;  %v6966_v14 = vpop.f32.mrb[29].mxu0  ;;  %v5715_v63 = vand.u32 4294901760, %v8583_v58  ;;  %7377 = vmatpush3.bf16.msra.mxu1 %v7367_v41  ;;  %7013 = vmatprep.mubr.msk.f32.mxu1 %vm7754_vm0, %v7755_v1  ;;  %v5724_v12 = vand.u32 4294901760, %v5723_v6 }
 0x8d9   :  { %7381 = vmatprep.subr.bf16.mxu1 %v7753_v0  ;;  %7038 = vmatprep.mubr.msk.f32.mxu0 %vm7754_vm0, %v7755_v1 }
 0x8da   :  { %v4964_v15 = vadd.f32 %v4963_v62, %v4889_v13  ;;  %v5708_v62 = vand.u32 4294901760, %v8581_v57  ;;  %v5716_v61 = vsub.f32 %v8583_v58, %v5715_v63  ;;  %7387 = vmatprep.subr.bf16.mxu0 %v7753_v0  ;;  %v7397_v13 = vpack.c.bf16 %v8581_v57, %v8579_v56 }
 0x8db   :  { %v5040_v16 = vpop.f32.mrb[30].mxu0  ;;  %7014 = vmatmul.mubr.f32.vlgmr.msra.gmra.mrb[60].mxu1 %v8197_v54  ;;  %v7388_v54 = vpack.c.bf16 %v5629_v55, %v5626_v50 }
 0x8dc   :  { %v5041_v17 = vadd.f32 %v5040_v16, %v4964_v15  ;;  %v6980_v18 = vpop.f32.mrb[31].mxu0  ;;  %v5709_v5 = vsub.f32 %v8581_v57, %v5708_v62  ;;  %7383 = vmatpush3.bf16.msra.mxu1 %v7367_v41  ;;  %7027 = vmatprep.mubr.msk.f32.mxu1 %vm7754_vm0, %v7755_v1  ;;  %v5717_v11 = vand.u32 4294901760, %v5716_v61  ;;  %v7409_v14 = vpack.c.bf16 %v5708_v62, %v5701_v60 }
 0x8dd   :  { %7390 = vmatprep.subr.bf16.mxu1 %v7753_v0  ;;  %7389 = vmatpush3.bf16.msra.mxu0 %v7388_v54  ;;  %v7412_v15 = vpack.c.bf16 %v5722_v49, %v5715_v63 }
 0x8de   :  { %v5114_v4 = vadd.f32 %v5113_v7, %v5041_v17  ;;  %v5703_v7 = vand.u32 4294901760, %v5702_v3  ;;  %v5710_v8 = vand.u32 4294901760, %v5709_v5  ;;  %v7394_v51 = vpack.c.bf16 %v5724_v12, %v5717_v11  ;;  %7396 = vmatprep.subr.bf16.mxu0 %v7753_v0 }
 0x8df   :  { %7028 = vmatmul.mubr.f32.vlgmr.msra.gmra.mrb[62].mxu1 %v8188_v48  ;;  %v7400_v48 = vpack.c.bf16 %v8585_v59, %v8583_v58 }
 0x8e0   :  { %v5117_v20 = vadd.f32 1.0, %v5114_v4  ;;  %v7391_v10 = vpack.c.bf16 %v5710_v8, %v5703_v7  ;;  %7049 = vmatprep.mubr.msk.f32.mxu1 %vm7754_vm0, %v7755_v1  ;;  %v6157_v4 = vld [vmem:[%s8681_s17 + $0x1] ss:$0 sm:$0xff] }
 0x8e2   :  { %v5118_v31 = vmul.f32 %v5117_v20, %v4642_v21  ;;  %7392 = vmatpush3.bf16.msra.mxu1 %v7391_v10  ;;  %v6158_v21 = vld [vmem:[%s8682_s18 + $0x1] ss:$0 sm:$0xff] }
 0x8e3   :  { %7393 = vmatprep.subr.bf16.mxu1 %v7753_v0 }
 0x8e4   :  { %v5119_v33 = vsel %vm2180_vm3, %v5118_v31, 0.0 }
 0x8e5   :  { %5120 = vadd.xlane.f32.xlu0 %v5119_v33 }
 0x8e6   :  { %7395 = vmatpush3.bf16.msra.mxu1 %v7394_v51 }
 0x8e7   :  { %7402 = vmatprep.subr.bf16.mxu1 %v7753_v0 }
 0x972   :  { %v5121_v22 = vpop.xlane.xlu0 %5120 }
 0x973   :  { %v5122_v23 = vmul.f32 0.03125, %v5121_v22 }
 0x975   :  { %v8555_v24 = vsub.f32 %v5118_v31, %v5122_v23 }
 0x977   :  { %v5124_v25 = vmul.f32 %v8555_v24, %v8555_v24 }
 0x979   :  { %v5125_v26 = vsel %vm2180_vm3, %v5124_v25, 0.0 }
 0x97a   :  { %5126 = vadd.xlane.f32.xlu1 %v5125_v26 }
 0x991   :  { %v5230_v36 = vpop.f32.mrb[32].mxu0 }
 0x992   :  { %v6994_v37 = vpop.f32.mrb[33].mxu0 }
 0x9a2   :  { %v5387_v40 = vpop.f32.mrb[34].mxu0 }
 0x9a3   :  { %v7008_v42 = vpop.f32.mrb[35].mxu0 }
 0x9a9   :  { %v5539_v46 = vpop.f32.mrb[36].mxu0 }
 0x9aa   :  { %v5311_v38 = vpop.f32.mrb[58].mxu1  ;;  %v7022_v50 = vpop.f32.mrb[37].mxu0 }
 0x9ab   :  { %v5312_v39 = vadd.f32 %v5311_v38, %v5230_v36  ;;  %v7001_v29 = vpop.f32.mrb[59].mxu1 }
 0x9ad   :  { %v5388_v41 = vadd.f32 %v5387_v40, %v5312_v39 }
 0x9ae   :  { %v5462_v43 = vpop.f32.mrb[60].mxu1 }
 0x9af   :  { %v5463_v44 = vadd.f32 %v5462_v43, %v5388_v41  ;;  %v7015_v45 = vpop.f32.mrb[61].mxu1 }
 0x9b1   :  { %v5540_v47 = vadd.f32 %v5539_v46, %v5463_v44 }
 0x9b2   :  { %v5612_v52 = vpop.f32.mrb[62].mxu1 }
 0x9b3   :  { %v5613_v53 = vadd.f32 %v5612_v52, %v5540_v47 }
 0xa07   :  { %v5127_v16 = vpop.xlane.xlu1 %5126 }
 0xa08   :  { %v5128_v17 = vmul.f32 0.03125, %v5127_v16 }
 0xa0a   :  { %v5129_v18 = vadd.f32 1e-05, %v5128_v17 }
 0xa0c   :  { %7481 = vrsqrt.f32 %v5129_v18 }
 0xa16   :  { %v7482_v19 = vpop.eup %7481 }
 0xa17   :  { %v5131_v20 = vmul.f32 %v7482_v19, %v8555_v24 }
 0xa19   :  { %v5138_v31 = vmul.f32 %v6157_v4, %v5131_v20 }
 0xa1b   :  { %v5145_v33 = vadd.f32 %v6158_v21, %v5138_v31 }
 0xa1d   :  { %v5147_v22 = vmul.f32 0.70710677, %v5145_v33  ;;  %v5146_v25 = vmul.f32 0.5, %v5145_v33 }
 0xa1f   :  { %7483 = verf.f32 %v5147_v22 }
 0xa29   :  { %v7484_v23 = vpop.eup %7483 }
 0xa2a   :  { %v5149_v26 = vadd.f32 1.0, %v7484_v23 }
 0xa2c   :  { %v5150_v27 = vmul.f32 %v5149_v26, %v5146_v25 }
 0xa2e   :  { %v5617_v28 = vsel %vm2180_vm3, %v5150_v27, 0 }
 0xa2f   :  { %v5688_v30 = vand.u32 4294901760, %v5617_v28 }
 0xa31   :  { %v5689_v32 = vsub.f32 %v5617_v28, %v5688_v30  ;;  %7050 = vmatmul.mubr.f32.vlgmr.msra.gmra.mrb[64].mxu1 %v5688_v30 }
 0xa32   :  { %7404 = vmatpush3.bf16.msra.mxu1 %v7385_v9  ;;  %7071 = vmatprep.mubr.msk.f32.mxu1 %vm7754_vm0, %v7755_v1 }
 0xa33   :  { %7405 = vmatprep.subr.bf16.mxu1 %v7753_v0  ;;  %v5690_v24 = vand.u32 4294901760, %v5689_v32 }
 0xa35   :  { %v5691_v34 = vsub.f32 %v5689_v32, %v5690_v24 }
 0xa36   :  { %7407 = vmatpush3.bf16.msra.mxu1 %v7388_v54 }
 0xa37   :  { %7414 = vmatprep.subr.bf16.mxu1 %v7753_v0  ;;  %v5692_v35 = vand.u32 4294901760, %v5691_v34 }
 0xa39   :  { %7072 = vmatmul.mubr.f32.vlgmr.msra.gmra.mrb[66].mxu1 %v5690_v24  ;;  %7039 = vmatmul.mubr.f32.vlgmr.msra.gmra.mrb[38].mxu0 %v5692_v35 }
 0xa3a   :  { %7398 = vmatpush3.bf16.msra.mxu0 %v7397_v13  ;;  %7416 = vmatpush3.bf16.msra.mxu1 %v7385_v9  ;;  %v6159_v9 = vld [vmem:[%s8714_s12] ss:$0 sm:$0xff] }
 0xa3b   :  { %7399 = vmatprep.subr.bf16.mxu0 %v7753_v0  ;;  %7417 = vmatprep.subr.bf16.mxu1 %v7753_v0 }
 0xa3c   :  { %7060 = vmatprep.mubr.msk.f32.mxu0 %vm7754_vm0, %v7755_v1  ;;  %7093 = vmatprep.mubr.msk.f32.mxu1 %vm7754_vm0, %v7755_v1 }
 0xa3e   :  { %7401 = vmatpush3.bf16.msra.mxu0 %v7400_v48  ;;  %7419 = vmatpush3.bf16.msra.mxu1 %v7388_v54 }
 0xa3f   :  { %7408 = vmatprep.subr.bf16.mxu0 %v7753_v0 }
 0xa41   :  { %7061 = vmatmul.mubr.f32.vlgmr.msra.gmra.mrb[40].mxu0 %v5689_v32  ;;  %7094 = vmatmul.mubr.f32.vlgmr.msra.gmra.mrb[68].mxu1 %v5688_v30 }
 0xa42   :  { %7410 = vmatpush3.bf16.msra.mxu0 %v7409_v14  ;;  %7082 = vmatprep.mubr.msk.f32.mxu0 %vm7754_vm0, %v7755_v1  ;;  %v7029_v1 = vpop.f32.mrb[63].mxu1 }
 0xa43   :  { %7411 = vmatprep.subr.bf16.mxu0 %v7753_v0 }
 0xa46   :  { %7413 = vmatpush3.bf16.msra.mxu0 %v7412_v15 }
 0xa49   :  { %7083 = vmatmul.mubr.f32.vlgmr.msra.gmra.mrb[42].mxu0 %v5688_v30 }
 0xb04   :  { %v5785_v0 = vpop.f32.mrb[64].mxu1 }
 0xb05   :  { %v7051_v55 = vpop.f32.mrb[65].mxu1 }
 0xb0c   :  { %v5942_v56 = vpop.f32.mrb[66].mxu1  ;;  %v5694_v57 = vpop.f32.mrb[38].mxu0 }
 0xb0d   :  { %v5695_v58 = vadd.f32 %v5694_v57, %v5613_v53  ;;  %v7073_v59 = vpop.f32.mrb[67].mxu1  ;;  %v7040_v60 = vpop.f32.mrb[39].mxu0 }
 0xb0f   :  { %v5786_v62 = vadd.f32 %v5785_v0, %v5695_v58 }
 0xb14   :  { %v5865_v63 = vpop.f32.mrb[40].mxu0  ;;  %v6100_v2 = vpop.f32.mrb[68].mxu1 }
 0xb15   :  { %v5866_v49 = vadd.f32 %v5865_v63, %v5786_v62  ;;  %v7062_v3 = vpop.f32.mrb[41].mxu0  ;;  %v7095_v5 = vpop.f32.mrb[69].mxu1 }
 0xb17   :  { %v5943_v61 = vadd.f32 %v5942_v56, %v5866_v49 }
 0xb1c   :  { %v6025_v6 = vpop.f32.mrb[42].mxu0 }
 0xb1d   :  { %v6026_v7 = vadd.f32 %v6025_v6, %v5943_v61  ;;  %v7084_v8 = vpop.f32.mrb[43].mxu0 }
 0xb1f   :  { %v6101_v10 = vadd.f32 %v6100_v2, %v6026_v7 }
 0xb21   :  { %v6111_v11 = vadd.f32 %v6159_v9, %v6101_v10 }
 0xb23   :  { %6112 = vst.msk [vmem:[#allocation19] sm:$0xff] %vm766_vm2, %v6111_v11 }
 0xb24   :  { %7716 = shalt.err (!%p7713_p0)
}
 0xb25   :  { %s8715_s28 = sld [smem:[#allocation36_spill]] }
 0xb2b   :  { %s7717_s23 = scalar_lea.hbm %s8715_s28, 128 }
 0xb2c   :  { %p7718_p1 = scmp.ne.s32.totalorder %s8715_s28, %s7717_s23  ;;  %p7721_p2 = scmp.lt.u32.totalorder %s7717_s23, %s8715_s28 }
 0xb2e   :  { %p7723_p3 = pnand %p7721_p2, %p7718_p1 }
 0xb30   :  { %7726 = shalt.err (!%p7723_p3)
}
 0xb31   :  { %6122 = dma.vmem_to_hbm [thread:$0]  %s6120_s27, 128, %s8715_s28, [#allocation4]  }
 0xb32   :  { %7739 = dma.done.wait [#allocation4], 128  }
 0xb33   :  { %7740 = vsyncadd [#allocation4], 4294967168 }
 0xb34   :  { %6126 = vsyncpa [#allocation3], 1 }
 0xb35   :  { %6127 = vsyncpa [#allocation6], 1 }
 0xb36   :  { %6128 = vsyncpa [#allocation9], 1 }
 0xb37   :  { %6129 = vsyncpa [#allocation12], 1 }
 0xb38   :  { %6130 = vsyncpa [#allocation15], 1 }
 0xb39   :  { %6131 = vsyncpa [#allocation18], 1 }
 0xb3a   :  { %6132 = vsyncpa [#allocation4], 1 }

</bundles_post_ra>
